<compile_context>
chip_gen: v7x
topology: tpu7x:2x2x1
jax: 0.10.0
libtpu: 0.0.40
codegen_flags: <defaults>
</compile_context>

<pallas_src>
from functools import partial

import jax
import jax.numpy as jnp
from jax.experimental import pallas as pl
from jax.experimental.pallas import tpu as pltpu

NEG_INF = -1e9
MXU_DTYPE = jnp.float32   # flip to jnp.bfloat16 on v6e / v7x for 2x matmul rate


def _pick_tile(dim, max_tile):
    """Largest tile <= max_tile that divides dim (full dim if it already fits)."""
    if dim <= max_tile:
        return dim
    t = max_tile
    while dim % t != 0 and t > 1:
        t //= 2
    return max(t, 1)


# ----------------------------------------------------------------------------
# Kernel 1: tiled dense  (out = relu?(x @ w + b))
# ----------------------------------------------------------------------------
def _dense_kernel(x_ref, w_ref, b_ref, o_ref, acc_ref, *, relu):
    @pl.when(pl.program_id(2) == 0)
    def _():
        acc_ref[...] = jnp.zeros_like(acc_ref)

    acc_ref[...] += jnp.dot(x_ref[...], w_ref[...],
                            preferred_element_type=jnp.float32)

    @pl.when(pl.program_id(2) == pl.num_programs(2) - 1)
    def _():
        acc = acc_ref[...] + b_ref[...]
        if relu:
            acc = jnp.maximum(acc, 0.0)
        o_ref[...] = acc.astype(o_ref.dtype)


def pallas_dense(x, w, b=None, relu=False, tm=256, tn=512, tk=512):
    M, K = x.shape
    N = w.shape[1]
    if b is None:
        b = jnp.zeros((N,), jnp.float32)
    tm, tn, tk = _pick_tile(M, tm), _pick_tile(N, tn), _pick_tile(K, tk)
    grid = (M // tm, N // tn, K // tk)
    return pl.pallas_call(
        partial(_dense_kernel, relu=relu),
        out_shape=jax.ShapeDtypeStruct((M, N), jnp.float32),
        grid=grid,
        in_specs=[
            pl.BlockSpec((tm, tk), lambda i, j, k: (i, k)),
            pl.BlockSpec((tk, tn), lambda i, j, k: (k, j)),
            pl.BlockSpec((1, tn), lambda i, j, k: (0, j)),
        ],
        out_specs=pl.BlockSpec((tm, tn), lambda i, j, k: (i, j)),
        scratch_shapes=[pltpu.VMEM((tm, tn), jnp.float32)],
        compiler_params=pltpu.CompilerParams(
            dimension_semantics=("parallel", "parallel", "arbitrary")),
    )(x.astype(MXU_DTYPE), w.astype(MXU_DTYPE),
      b.reshape(1, N).astype(jnp.float32))


# ----------------------------------------------------------------------------
# Kernel 2: tiled dense with fused bias + residual + LayerNorm epilogue
#   out = LayerNorm(x @ w + b + residual) * gamma + beta
# (N == E is kept as a single block so the LN row reduction stays in-kernel.)
# ----------------------------------------------------------------------------
def _dense_addln_kernel(x_ref, w_ref, b_ref, r_ref, g_ref, bt_ref,
                        o_ref, acc_ref, *, eps):
    @pl.when(pl.program_id(1) == 0)
    def _():
        acc_ref[...] = jnp.zeros_like(acc_ref)

    acc_ref[...] += jnp.dot(x_ref[...], w_ref[...],
                            preferred_element_type=jnp.float32)

    @pl.when(pl.program_id(1) == pl.num_programs(1) - 1)
    def _():
        y = acc_ref[...] + b_ref[...] + r_ref[...]
        mean = jnp.mean(y, axis=-1, keepdims=True)
        yc = y - mean
        var = jnp.mean(yc * yc, axis=-1, keepdims=True)
        yn = yc * jax.lax.rsqrt(var + eps)
        o_ref[...] = (yn * g_ref[...] + bt_ref[...]).astype(o_ref.dtype)


def pallas_dense_add_layernorm(x, w, b, residual, gamma, beta,
                               eps=1e-5, tm=256, tk=512):
    M, K = x.shape
    N = w.shape[1]
    tm, tk = _pick_tile(M, tm), _pick_tile(K, tk)
    grid = (M // tm, K // tk)
    return pl.pallas_call(
        partial(_dense_addln_kernel, eps=eps),
        out_shape=jax.ShapeDtypeStruct((M, N), jnp.float32),
        grid=grid,
        in_specs=[
            pl.BlockSpec((tm, tk), lambda i, k: (i, k)),
            pl.BlockSpec((tk, N), lambda i, k: (k, 0)),
            pl.BlockSpec((1, N), lambda i, k: (0, 0)),
            pl.BlockSpec((tm, N), lambda i, k: (i, 0)),
            pl.BlockSpec((1, N), lambda i, k: (0, 0)),
            pl.BlockSpec((1, N), lambda i, k: (0, 0)),
        ],
        out_specs=pl.BlockSpec((tm, N), lambda i, k: (i, 0)),
        scratch_shapes=[pltpu.VMEM((tm, N), jnp.float32)],
        compiler_params=pltpu.CompilerParams(
            dimension_semantics=("parallel", "arbitrary")),
    )(x.astype(MXU_DTYPE), w.astype(MXU_DTYPE),
      b.reshape(1, N).astype(jnp.float32), residual.astype(jnp.float32),
      gamma.reshape(1, N).astype(jnp.float32),
      beta.reshape(1, N).astype(jnp.float32))


# ----------------------------------------------------------------------------
# Kernel 3: multi-head attention, one grid step per batch element.
#   q, k, v : (Sq|Sk, E) lane-dense blocks; bias : (Sq, Sk) additive (-1e9 masked)
#   output  : (Sq, E) lane-dense block (heads concatenated along lanes)
# ----------------------------------------------------------------------------
def _attn_kernel(q_ref, k_ref, v_ref, bias_ref, o_ref, *,
                 scale, num_heads, head_dim):
    q = q_ref[0]          # (Sq, E)
    k = k_ref[0]          # (Sk, E)
    v = v_ref[0]          # (Sk, E)
    bias = bias_ref[0]    # (Sq, Sk) additive mask

    outs = []
    for h in range(num_heads):                       # static unroll over heads
        lo = h * head_dim
        qh = q[:, lo:lo + head_dim]
        kh = k[:, lo:lo + head_dim]
        vh = v[:, lo:lo + head_dim]
        s = jnp.dot(qh, kh.T, preferred_element_type=jnp.float32) * scale + bias
        m = jnp.max(s, axis=-1, keepdims=True)
        e = jnp.exp(s - m)
        denom = jnp.sum(e, axis=-1, keepdims=True)
        p = e * pl.reciprocal(denom, approx=True)
        outs.append(jnp.dot(p, vh, preferred_element_type=jnp.float32))
    o_ref[0] = jnp.concatenate(outs, axis=-1)        # lane-dense (Sq, E) store


def pallas_attention(q, k, v, bias, num_heads):
    """q: (B, Sq, E), k/v: (B, Sk, E), bias: (B, Sq, Sk) additive. -> (B, Sq, E)"""
    B, Sq, E = q.shape
    Sk = k.shape[1]
    Dh = E // num_heads
    scale = 1.0 / float(Dh) ** 0.5
    # TODO(synk): for long Sk, convert to online-softmax (flash) with a kv grid
    # axis instead of materializing the full (Sq, Sk) score matrix.
    return pl.pallas_call(
        partial(_attn_kernel, scale=scale, num_heads=num_heads, head_dim=Dh),
        out_shape=jax.ShapeDtypeStruct((B, Sq, E), jnp.float32),
        grid=(B,),
        in_specs=[
            pl.BlockSpec((1, Sq, E), lambda b: (b, 0, 0)),
            pl.BlockSpec((1, Sk, E), lambda b: (b, 0, 0)),
            pl.BlockSpec((1, Sk, E), lambda b: (b, 0, 0)),
            pl.BlockSpec((1, Sq, Sk), lambda b: (b, 0, 0)),
        ],
        out_specs=pl.BlockSpec((1, Sq, E), lambda b: (b, 0, 0)),
        compiler_params=pltpu.CompilerParams(
            dimension_semantics=("parallel",)),
    )(q.astype(jnp.float32), k.astype(jnp.float32),
      v.astype(jnp.float32), bias.astype(jnp.float32))


# ----------------------------------------------------------------------------
# Model glue (plain JAX around the Pallas kernels)
# ----------------------------------------------------------------------------
def encoder_layer(x, self_bias, lp, num_heads):
    B, S, E = x.shape
    x2 = x.reshape(B * S, E)
    # self-attention: fused QKV, per-batch attention, fused out-proj + add + LN
    qkv = pallas_dense(x2, lp["wqkv"], lp["bqkv"]).reshape(B, S, 3 * E)
    a = pallas_attention(qkv[..., :E], qkv[..., E:2 * E], qkv[..., 2 * E:],
                         self_bias, num_heads)
    x2 = pallas_dense_add_layernorm(a.reshape(B * S, E), lp["wo"], lp["bo"],
                                    x2, lp["ln1_g"], lp["ln1_b"])
    # feed-forward: dense+relu, then dense fused with add + LN
    h = pallas_dense(x2, lp["ff_w1"], lp["ff_b1"], relu=True)
    x2 = pallas_dense_add_layernorm(h, lp["ff_w2"], lp["ff_b2"],
                                    x2, lp["ln2_g"], lp["ln2_b"])
    return x2.reshape(B, S, E)


def decoder_layer(x, self_bias, enc_x, cross_bias, lp, num_heads):
    B, S, E = x.shape
    Lenc = enc_x.shape[1]
    x2 = x.reshape(B * S, E)

    # masked self-attention
    qkv = pallas_dense(x2, lp["self_wqkv"], lp["self_bqkv"]).reshape(B, S, 3 * E)
    a = pallas_attention(qkv[..., :E], qkv[..., E:2 * E], qkv[..., 2 * E:],
                         self_bias, num_heads)
    x2 = pallas_dense_add_layernorm(a.reshape(B * S, E), lp["self_wo"],
                                    lp["self_bo"], x2, lp["ln1_g"], lp["ln1_b"])

    # cross-attention (Q from decoder state, fused K/V from encoder output)
    q = pallas_dense(x2, lp["cross_wq"], lp["cross_bq"]).reshape(B, S, E)
    kv = pallas_dense(enc_x.reshape(B * Lenc, E), lp["cross_wkv"],
                      lp["cross_bkv"]).reshape(B, Lenc, 2 * E)
    c = pallas_attention(q, kv[..., :E], kv[..., E:], cross_bias, num_heads)
    x2 = pallas_dense_add_layernorm(c.reshape(B * S, E), lp["cross_wo"],
                                    lp["cross_bo"], x2, lp["ln2_g"], lp["ln2_b"])

    # feed-forward
    h = pallas_dense(x2, lp["ff_w1"], lp["ff_b1"], relu=True)
    x2 = pallas_dense_add_layernorm(h, lp["ff_w2"], lp["ff_b2"],
                                    x2, lp["ln3_g"], lp["ln3_b"])
    return x2.reshape(B, S, E)


def encoder_forward(params, spectrum, spec_mask, num_heads):
    """Mirrors Encoder.forward."""
    B, C, F, T = spectrum.shape
    x = jnp.swapaxes(spectrum.reshape(B, C * F, T), 1, 2)      # (B, T, C*F)
    S, Din = T, C * F
    E = params["w_in"].shape[1]

    # additive self-attention bias, built once and reused by all layers
    neg = spec_mask < 1                                        # (B, T)
    self_mask = jnp.logical_or(neg[:, None, :], neg[:, :, None])
    self_bias = jnp.where(self_mask, NEG_INF, 0.0).astype(jnp.float32)

    # norm_in(lin_in(x)) + PE  (dropout = identity)
    zero_res = jnp.zeros((B * S, E), jnp.float32)
    h = pallas_dense_add_layernorm(x.reshape(B * S, Din), params["w_in"],
                                   params["b_in"], zero_res,
                                   params["ln_in_g"], params["ln_in_b"])
    h = h.reshape(B, S, E) + params["pe"][None, :S, :]

    for lp in params["layers"]:
        h = encoder_layer(h, self_bias, lp, num_heads)
    return h


def decoder_forward(params, x_ids, mask, enc_x, enc_mask, num_heads):
    """Mirrors Decoder.forward (dropout == identity)."""
    B, S = x_ids.shape
    Lenc = enc_x.shape[1]
    E = params["emb"].shape[1]

    # --- mask construction (same semantics as the PyTorch code), built once ---
    mask_neg = mask < 1                                        # (B, S)
    enc_neg = enc_mask < 1                                     # (B, Lenc)
    causal = jnp.triu(jnp.ones((S, S), jnp.float32), k=1) > 0  # (S, S)
    self_mask = jnp.logical_or(mask_neg[:, None, :], mask_neg[:, :, None])
    self_mask = jnp.logical_or(self_mask, causal[None, :, :])
    cross_mask = jnp.logical_or(enc_neg[:, None, :], mask_neg[:, :, None])
    self_bias = jnp.where(self_mask, NEG_INF, 0.0).astype(jnp.float32)
    cross_bias = jnp.where(cross_mask, NEG_INF, 0.0).astype(jnp.float32)

    # --- embedding + trainable positional encoding (dropout = identity) ---
    h = jnp.take(params["emb"], x_ids, axis=0) + params["pe"][None, :S, :]

    for lp in params["layers"]:
        h = decoder_layer(h, self_bias, enc_x, cross_bias, lp, num_heads)

    # --- classifier (Linear, no bias) ---
    logits = pallas_dense(h.reshape(B * S, E), params["cls_w"], None)
    return logits.reshape(B, S, -1)


def transformer_forward(params, spectrum, spectrum_mask, text, mask, num_heads):
    """Mirrors Transformer.forward (vgg=False path)."""
    enc_x = encoder_forward(params["encoder"], spectrum, spectrum_mask, num_heads)
    return decoder_forward(params["decoder"], text, mask, enc_x, spectrum_mask,
                           num_heads)


# ----------------------------------------------------------------------------
# Deterministic parameter initialization
# ----------------------------------------------------------------------------
def init_transformer_params(key, *, vocab_size, input_dim, emb_dim, dec_seq_len,
                            enc_seq_len, enc_layers, dec_layers, ff_dim,
                            pad_token_id):
    keys = iter(jax.random.split(key, 128))

    def nrm(shape):
        return 0.02 * jax.random.normal(next(keys), shape, jnp.float32)

    zeros = lambda n: jnp.zeros((n,), jnp.float32)
    ones = lambda n: jnp.ones((n,), jnp.float32)

    enc = {"w_in": nrm((input_dim, emb_dim)), "b_in": zeros(emb_dim),
           "ln_in_g": ones(emb_dim), "ln_in_b": zeros(emb_dim),
           "pe": nrm((enc_seq_len, emb_dim)), "layers": []}
    for _ in range(enc_layers):
        enc["layers"].append({
            "wqkv": nrm((emb_dim, 3 * emb_dim)), "bqkv": zeros(3 * emb_dim),
            "wo": nrm((emb_dim, emb_dim)), "bo": zeros(emb_dim),
            "ln1_g": ones(emb_dim), "ln1_b": zeros(emb_dim),
            "ff_w1": nrm((emb_dim, ff_dim)), "ff_b1": zeros(ff_dim),
            "ff_w2": nrm((ff_dim, emb_dim)), "ff_b2": zeros(emb_dim),
            "ln2_g": ones(emb_dim), "ln2_b": zeros(emb_dim),
        })

    emb = nrm((vocab_size, emb_dim)).at[pad_token_id].set(0.0)   # padding_idx
    dec = {"emb": emb, "pe": nrm((dec_seq_len, emb_dim)),
           "cls_w": nrm((emb_dim, vocab_size)), "layers": []}
    for _ in range(dec_layers):
        dec["layers"].append({
            "self_wqkv": nrm((emb_dim, 3 * emb_dim)), "self_bqkv": zeros(3 * emb_dim),
            "self_wo": nrm((emb_dim, emb_dim)), "self_bo": zeros(emb_dim),
            "ln1_g": ones(emb_dim), "ln1_b": zeros(emb_dim),
            "cross_wq": nrm((emb_dim, emb_dim)), "cross_bq": zeros(emb_dim),
            "cross_wkv": nrm((emb_dim, 2 * emb_dim)), "cross_bkv": zeros(2 * emb_dim),
            "cross_wo": nrm((emb_dim, emb_dim)), "cross_bo": zeros(emb_dim),
            "ln2_g": ones(emb_dim), "ln2_b": zeros(emb_dim),
            "ff_w1": nrm((emb_dim, ff_dim)), "ff_b1": zeros(ff_dim),
            "ff_w2": nrm((ff_dim, emb_dim)), "ff_b2": zeros(emb_dim),
            "ln3_g": ones(emb_dim), "ln3_b": zeros(emb_dim),
        })
    return {"encoder": enc, "decoder": dec}


# ----------------------------------------------------------------------------
if __name__ == "__main__":
    # small, module-consistent shapes
    VOCAB = 50
    EMB = 32
    HEADS = 4
    FF = 64
    ENC_LAYERS = 2
    DEC_LAYERS = 2
    DEC_SEQ = 8
    B, C, FREQ, T = 2, 1, 32, 8          # spectrum (B, 1, 32, 8) -> input_dim 32
    PAD_ID, EOS_ID = 4, 2

    key = jax.random.PRNGKey(0)
    k_param, k_spec, k_txt = jax.random.split(key, 3)

    params = init_transformer_params(
        k_param, vocab_size=VOCAB, input_dim=C * FREQ, emb_dim=EMB,
        dec_seq_len=DEC_SEQ, enc_seq_len=T, enc_layers=ENC_LAYERS,
        dec_layers=DEC_LAYERS, ff_dim=FF, pad_token_id=PAD_ID)

    spectrum = jax.random.normal(k_spec, (B, C, FREQ, T), jnp.float32)
    spectrum_mask = jnp.ones((B, T), jnp.int32).at[1, -1].set(0)   # 1 = valid
    text = jax.random.randint(k_txt, (B, DEC_SEQ), 5, VOCAB, dtype=jnp.int32)
    mask = jnp.ones((B, DEC_SEQ), jnp.int32).at[1, -2:].set(0)     # 1 = valid

    # TODO(synk): dropout is a no-op (eval semantics); Decoder.evaluate's
    # autoregressive loop and the vgg=True branch are not implemented.
    fwd = jax.jit(partial(transformer_forward, num_heads=HEADS))
    logits = fwd(params, spectrum, spectrum_mask, text, mask)
    jax.block_until_ready(logits)

    assert logits.shape == (B, DEC_SEQ, VOCAB)
    assert bool(jnp.all(jnp.isfinite(logits)))
    print("KERNEL_OK")
</pallas_src>

<mosaic_0001>
module attributes {stable_mosaic.version = 11 : i64} {
  func.func @_dense_kernel(%arg0: i32, %arg1: i32, %arg2: i32, %arg3: memref<16x32xf32, #tpu.memory_space<vmem>>, %arg4: memref<32x64xf32, #tpu.memory_space<vmem>>, %arg5: memref<1x64xf32, #tpu.memory_space<vmem>>, %arg6: memref<16x64xf32, #tpu.memory_space<vmem>>, %arg7: memref<16x64xf32, #tpu.memory_space<vmem>>) attributes {dimension_semantics = [#tpu.dimension_semantics<parallel>, #tpu.dimension_semantics<parallel>, #tpu.dimension_semantics<arbitrary>], iteration_bounds = array<i64: 1, 1, 1>, scalar_prefetch = 0 : i64, scratch_operands = 1 : i64, tpu.core_type = #tpu.core_type<tc>, window_params = [{transform_indices = @transform_0, window_bounds = array<i64: 16, 32>}, {transform_indices = @transform_1, window_bounds = array<i64: 32, 64>}, {transform_indices = @transform_2, window_bounds = array<i64: 1, 64>}, {transform_indices = @transform_3, window_bounds = array<i64: 16, 64>}]} {
    %c0_i32 = arith.constant 0 : i32
    %0 = arith.cmpi eq, %arg2, %c0_i32 : i32
    %1 = arith.extui %0 : i1 to i32
    %c0_i32_0 = arith.constant 0 : i32
    %2 = arith.cmpi ne, %1, %c0_i32_0 : i32
    scf.if %2 {
      %cst_10 = arith.constant 0.000000e+00 : f32
      %12 = vector.broadcast %cst_10 : f32 to vector<16x64xf32>
      %c0_11 = arith.constant 0 : index
      %c0_12 = arith.constant 0 : index
      %13 = vector.load %arg7[%c0_11, %c0_12] : memref<16x64xf32, #tpu.memory_space<vmem>>, vector<16x64xf32>
      tpu.vector_store %arg7[%c0_11, %c0_12], %12 {strides = array<i32>} : memref<16x64xf32, #tpu.memory_space<vmem>>, vector<16x64xf32>,
    } else {
    }
    %c0 = arith.constant 0 : index
    %c0_1 = arith.constant 0 : index
    %3 = vector.load %arg7[%c0, %c0_1] : memref<16x64xf32, #tpu.memory_space<vmem>>, vector<16x64xf32>
    %c0_2 = arith.constant 0 : index
    %c0_3 = arith.constant 0 : index
    %4 = vector.load %arg3[%c0_2, %c0_3] : memref<16x32xf32, #tpu.memory_space<vmem>>, vector<16x32xf32>
    %c0_4 = arith.constant 0 : index
    %c0_5 = arith.constant 0 : index
    %5 = vector.load %arg4[%c0_4, %c0_5] : memref<32x64xf32, #tpu.memory_space<vmem>>, vector<32x64xf32>
    %cst = arith.constant dense<0.000000e+00> : vector<16x64xf32>
    %6 = tpu.matmul %4, %5, %cst {dimension_numbers = #tpu.dot_dimension_numbers<[1], [0], [0], [1], [0, 0, 1, 1], [], []>} : vector<16x32xf32>, vector<32x64xf32>, vector<16x64xf32> -> vector<16x64xf32>
    %7 = arith.addf %3, %6 : vector<16x64xf32>
    %c0_6 = arith.constant 0 : index
    %c0_7 = arith.constant 0 : index
    %8 = vector.load %arg7[%c0_6, %c0_7] : memref<16x64xf32, #tpu.memory_space<vmem>>, vector<16x64xf32>
    tpu.vector_store %arg7[%c0_6, %c0_7], %7 {strides = array<i32>} : memref<16x64xf32, #tpu.memory_space<vmem>>, vector<16x64xf32>,
    %c0_i32_8 = arith.constant 0 : i32
    %9 = arith.cmpi eq, %arg2, %c0_i32_8 : i32
    %10 = arith.extui %9 : i1 to i32
    %c0_i32_9 = arith.constant 0 : i32
    %11 = arith.cmpi ne, %10, %c0_i32_9 : i32
    scf.if %11 {
      %c0_10 = arith.constant 0 : index
      %c0_11 = arith.constant 0 : index
      %12 = vector.load %arg7[%c0_10, %c0_11] : memref<16x64xf32, #tpu.memory_space<vmem>>, vector<16x64xf32>
      %c0_12 = arith.constant 0 : index
      %c0_13 = arith.constant 0 : index
      %13 = vector.load %arg5[%c0_12, %c0_13] : memref<1x64xf32, #tpu.memory_space<vmem>>, vector<1x64xf32>
      %14 = vector.broadcast %13 : vector<1x64xf32> to vector<16x64xf32>
      %15 = arith.addf %12, %14 : vector<16x64xf32>
      %cst_14 = arith.constant 0.000000e+00 : f32
      %16 = vector.broadcast %cst_14 : f32 to vector<16x64xf32>
      %17 = arith.maximumf %15, %16 : vector<16x64xf32>
      %c0_15 = arith.constant 0 : index
      %c0_16 = arith.constant 0 : index
      %18 = vector.load %arg6[%c0_15, %c0_16] : memref<16x64xf32, #tpu.memory_space<vmem>>, vector<16x64xf32>
      tpu.vector_store %arg6[%c0_15, %c0_16], %17 {strides = array<i32>} : memref<16x64xf32, #tpu.memory_space<vmem>>, vector<16x64xf32>,
    } else {
    }
    return
  }
  func.func @transform_0(%arg0: i32, %arg1: i32, %arg2: i32) -> (i32, i32) {
    %c0_i32 = arith.constant 0 : i32
    return %arg0, %arg2 : i32, i32
  }
  func.func @transform_1(%arg0: i32, %arg1: i32, %arg2: i32) -> (i32, i32) {
    %c0_i32 = arith.constant 0 : i32
    return %arg2, %arg1 : i32, i32
  }
  func.func @transform_2(%arg0: i32, %arg1: i32, %arg2: i32) -> (i32, i32) {
    %c0_i32 = arith.constant 0 : i32
    %c0_i32_0 = arith.constant 0 : i32
    return %c0_i32, %arg1 : i32, i32
  }
  func.func @transform_3(%arg0: i32, %arg1: i32, %arg2: i32) -> (i32, i32) {
    %c0_i32 = arith.constant 0 : i32
    return %arg0, %arg1 : i32, i32
  }
}

module attributes {stable_mosaic.version = 11 : i64} {
  func.func @_dense_addln_kernel(%arg0: i32, %arg1: i32, %arg2: memref<16x32xf32, #tpu.memory_space<vmem>>, %arg3: memref<32x32xf32, #tpu.memory_space<vmem>>, %arg4: memref<1x32xf32, #tpu.memory_space<vmem>>, %arg5: memref<16x32xf32, #tpu.memory_space<vmem>>, %arg6: memref<1x32xf32, #tpu.memory_space<vmem>>, %arg7: memref<1x32xf32, #tpu.memory_space<vmem>>, %arg8: memref<16x32xf32, #tpu.memory_space<vmem>>, %arg9: memref<16x32xf32, #tpu.memory_space<vmem>>) attributes {dimension_semantics = [#tpu.dimension_semantics<parallel>, #tpu.dimension_semantics<arbitrary>], iteration_bounds = array<i64: 1, 1>, scalar_prefetch = 0 : i64, scratch_operands = 1 : i64, tpu.core_type = #tpu.core_type<tc>, window_params = [{transform_indices = @transform_0, window_bounds = array<i64: 16, 32>}, {transform_indices = @transform_1, window_bounds = array<i64: 32, 32>}, {pipeline_mode = #tpu.pipeline_mode<synchronous>, transform_indices = @transform_2, window_bounds = array<i64: 1, 32>}, {transform_indices = @transform_3, window_bounds = array<i64: 16, 32>}, {pipeline_mode = #tpu.pipeline_mode<synchronous>, transform_indices = @transform_4, window_bounds = array<i64: 1, 32>}, {pipeline_mode = #tpu.pipeline_mode<synchronous>, transform_indices = @transform_5, window_bounds = array<i64: 1, 32>}, {transform_indices = @transform_6, window_bounds = array<i64: 16, 32>}]} {
    %c0_i32 = arith.constant 0 : i32
    %0 = arith.cmpi eq, %arg1, %c0_i32 : i32
    %1 = arith.extui %0 : i1 to i32
    %c0_i32_0 = arith.constant 0 : i32
    %2 = arith.cmpi ne, %1, %c0_i32_0 : i32
    scf.if %2 {
      %cst_10 = arith.constant 0.000000e+00 : f32
      %12 = vector.broadcast %cst_10 : f32 to vector<16x32xf32>
      %c0_11 = arith.constant 0 : index
      %c0_12 = arith.constant 0 : index
      %13 = vector.load %arg9[%c0_11, %c0_12] : memref<16x32xf32, #tpu.memory_space<vmem>>, vector<16x32xf32>
      tpu.vector_store %arg9[%c0_11, %c0_12], %12 {strides = array<i32>} : memref<16x32xf32, #tpu.memory_space<vmem>>, vector<16x32xf32>,
    } else {
    }
    %c0 = arith.constant 0 : index
    %c0_1 = arith.constant 0 : index
    %3 = vector.load %arg9[%c0, %c0_1] : memref<16x32xf32, #tpu.memory_space<vmem>>, vector<16x32xf32>
    %c0_2 = arith.constant 0 : index
    %c0_3 = arith.constant 0 : index
    %4 = vector.load %arg2[%c0_2, %c0_3] : memref<16x32xf32, #tpu.memory_space<vmem>>, vector<16x32xf32>
    %c0_4 = arith.constant 0 : index
    %c0_5 = arith.constant 0 : index
    %5 = vector.load %arg3[%c0_4, %c0_5] : memref<32x32xf32, #tpu.memory_space<vmem>>, vector<32x32xf32>
    %cst = arith.constant dense<0.000000e+00> : vector<16x32xf32>
    %6 = tpu.matmul %4, %5, %cst {dimension_numbers = #tpu.dot_dimension_numbers<[1], [0], [0], [1], [0, 0, 1, 1], [], []>} : vector<16x32xf32>, vector<32x32xf32>, vector<16x32xf32> -> vector<16x32xf32>
    %7 = arith.addf %3, %6 : vector<16x32xf32>
    %c0_6 = arith.constant 0 : index
    %c0_7 = arith.constant 0 : index
    %8 = vector.load %arg9[%c0_6, %c0_7] : memref<16x32xf32, #tpu.memory_space<vmem>>, vector<16x32xf32>
    tpu.vector_store %arg9[%c0_6, %c0_7], %7 {strides = array<i32>} : memref<16x32xf32, #tpu.memory_space<vmem>>, vector<16x32xf32>,
    %c0_i32_8 = arith.constant 0 : i32
    %9 = arith.cmpi eq, %arg1, %c0_i32_8 : i32
    %10 = arith.extui %9 : i1 to i32
    %c0_i32_9 = arith.constant 0 : i32
    %11 = arith.cmpi ne, %10, %c0_i32_9 : i32
    scf.if %11 {
      %c0_10 = arith.constant 0 : index
      %c0_11 = arith.constant 0 : index
      %12 = vector.load %arg9[%c0_10, %c0_11] : memref<16x32xf32, #tpu.memory_space<vmem>>, vector<16x32xf32>
      %c0_12 = arith.constant 0 : index
      %c0_13 = arith.constant 0 : index
      %13 = vector.load %arg4[%c0_12, %c0_13] : memref<1x32xf32, #tpu.memory_space<vmem>>, vector<1x32xf32>
      %14 = vector.broadcast %13 : vector<1x32xf32> to vector<16x32xf32>
      %15 = arith.addf %12, %14 : vector<16x32xf32>
      %c0_14 = arith.constant 0 : index
      %c0_15 = arith.constant 0 : index
      %16 = vector.load %arg5[%c0_14, %c0_15] : memref<16x32xf32, #tpu.memory_space<vmem>>, vector<16x32xf32>
      %17 = arith.addf %15, %16 : vector<16x32xf32>
      %cst_16 = arith.constant dense<0.000000e+00> : vector<16xf32>
      %18 = vector.multi_reduction <add>, %17, %cst_16 [1] : vector<16x32xf32> to vector<16xf32>
      %19 = vector.shape_cast %18 : vector<16xf32> to vector<16x1xf32>
      %cst_17 = arith.constant 3.200000e+01 : f32
      %20 = vector.broadcast %cst_17 : f32 to vector<16x1xf32>
      %21 = arith.divf %19, %20 : vector<16x1xf32>
      %22 = vector.broadcast %21 : vector<16x1xf32> to vector<16x32xf32>
      %23 = arith.subf %17, %22 : vector<16x32xf32>
      %24 = arith.mulf %23, %23 : vector<16x32xf32>
      %cst_18 = arith.constant dense<0.000000e+00> : vector<16xf32>
      %25 = vector.multi_reduction <add>, %24, %cst_18 [1] : vector<16x32xf32> to vector<16xf32>
      %26 = vector.shape_cast %25 : vector<16xf32> to vector<16x1xf32>
      %cst_19 = arith.constant 3.200000e+01 : f32
      %27 = vector.broadcast %cst_19 : f32 to vector<16x1xf32>
      %28 = arith.divf %26, %27 : vector<16x1xf32>
      %cst_20 = arith.constant 9.99999974E-6 : f32
      %29 = vector.broadcast %cst_20 : f32 to vector<16x1xf32>
      %30 = arith.addf %28, %29 : vector<16x1xf32>
      %31 = math.rsqrt %30 : vector<16x1xf32>
      %32 = vector.broadcast %31 : vector<16x1xf32> to vector<16x32xf32>
      %33 = arith.mulf %23, %32 : vector<16x32xf32>
      %c0_21 = arith.constant 0 : index
      %c0_22 = arith.constant 0 : index
      %34 = vector.load %arg6[%c0_21, %c0_22] : memref<1x32xf32, #tpu.memory_space<vmem>>, vector<1x32xf32>
      %35 = vector.broadcast %34 : vector<1x32xf32> to vector<16x32xf32>
      %36 = arith.mulf %33, %35 : vector<16x32xf32>
      %c0_23 = arith.constant 0 : index
      %c0_24 = arith.constant 0 : index
      %37 = vector.load %arg7[%c0_23, %c0_24] : memref<1x32xf32, #tpu.memory_space<vmem>>, vector<1x32xf32>
      %38 = vector.broadcast %37 : vector<1x32xf32> to vector<16x32xf32>
      %39 = arith.addf %36, %38 : vector<16x32xf32>
      %c0_25 = arith.constant 0 : index
      %c0_26 = arith.constant 0 : index
      %40 = vector.load %arg8[%c0_25, %c0_26] : memref<16x32xf32, #tpu.memory_space<vmem>>, vector<16x32xf32>
      tpu.vector_store %arg8[%c0_25, %c0_26], %39 {strides = array<i32>} : memref<16x32xf32, #tpu.memory_space<vmem>>, vector<16x32xf32>,
    } else {
    }
    return
  }
  func.func @transform_0(%arg0: i32, %arg1: i32) -> (i32, i32) {
    %c0_i32 = arith.constant 0 : i32
    return %arg0, %arg1 : i32, i32
  }
  func.func @transform_1(%arg0: i32, %arg1: i32) -> (i32, i32) {
    %c0_i32 = arith.constant 0 : i32
    %c0_i32_0 = arith.constant 0 : i32
    return %arg1, %c0_i32 : i32, i32
  }
  func.func @transform_2(%arg0: i32, %arg1: i32) -> (i32, i32) {
    %c0_i32 = arith.constant 0 : i32
    %c0_i32_0 = arith.constant 0 : i32
    %c0_i32_1 = arith.constant 0 : i32
    return %c0_i32, %c0_i32_0 : i32, i32
  }
  func.func @transform_3(%arg0: i32, %arg1: i32) -> (i32, i32) {
    %c0_i32 = arith.constant 0 : i32
    %c0_i32_0 = arith.constant 0 : i32
    return %arg0, %c0_i32 : i32, i32
  }
  func.func @transform_4(%arg0: i32, %arg1: i32) -> (i32, i32) {
    %c0_i32 = arith.constant 0 : i32
    %c0_i32_0 = arith.constant 0 : i32
    %c0_i32_1 = arith.constant 0 : i32
    return %c0_i32, %c0_i32_0 : i32, i32
  }
  func.func @transform_5(%arg0: i32, %arg1: i32) -> (i32, i32) {
    %c0_i32 = arith.constant 0 : i32
    %c0_i32_0 = arith.constant 0 : i32
    %c0_i32_1 = arith.constant 0 : i32
    return %c0_i32, %c0_i32_0 : i32, i32
  }
  func.func @transform_6(%arg0: i32, %arg1: i32) -> (i32, i32) {
    %c0_i32 = arith.constant 0 : i32
    %c0_i32_0 = arith.constant 0 : i32
    return %arg0, %c0_i32 : i32, i32
  }
}

module attributes {stable_mosaic.version = 11 : i64} {
  func.func @_dense_kernel(%arg0: i32, %arg1: i32, %arg2: i32, %arg3: memref<16x32xf32, #tpu.memory_space<vmem>>, %arg4: memref<32x96xf32, #tpu.memory_space<vmem>>, %arg5: memref<1x96xf32, #tpu.memory_space<vmem>>, %arg6: memref<16x96xf32, #tpu.memory_space<vmem>>, %arg7: memref<16x96xf32, #tpu.memory_space<vmem>>) attributes {dimension_semantics = [#tpu.dimension_semantics<parallel>, #tpu.dimension_semantics<parallel>, #tpu.dimension_semantics<arbitrary>], iteration_bounds = array<i64: 1, 1, 1>, scalar_prefetch = 0 : i64, scratch_operands = 1 : i64, tpu.core_type = #tpu.core_type<tc>, window_params = [{transform_indices = @transform_0, window_bounds = array<i64: 16, 32>}, {transform_indices = @transform_1, window_bounds = array<i64: 32, 96>}, {transform_indices = @transform_2, window_bounds = array<i64: 1, 96>}, {transform_indices = @transform_3, window_bounds = array<i64: 16, 96>}]} {
    %c0_i32 = arith.constant 0 : i32
    %0 = arith.cmpi eq, %arg2, %c0_i32 : i32
    %1 = arith.extui %0 : i1 to i32
    %c0_i32_0 = arith.constant 0 : i32
    %2 = arith.cmpi ne, %1, %c0_i32_0 : i32
    scf.if %2 {
      %cst_10 = arith.constant 0.000000e+00 : f32
      %12 = vector.broadcast %cst_10 : f32 to vector<16x96xf32>
      %c0_11 = arith.constant 0 : index
      %c0_12 = arith.constant 0 : index
      %13 = vector.load %arg7[%c0_11, %c0_12] : memref<16x96xf32, #tpu.memory_space<vmem>>, vector<16x96xf32>
      tpu.vector_store %arg7[%c0_11, %c0_12], %12 {strides = array<i32>} : memref<16x96xf32, #tpu.memory_space<vmem>>, vector<16x96xf32>,
    } else {
    }
    %c0 = arith.constant 0 : index
    %c0_1 = arith.constant 0 : index
    %3 = vector.load %arg7[%c0, %c0_1] : memref<16x96xf32, #tpu.memory_space<vmem>>, vector<16x96xf32>
    %c0_2 = arith.constant 0 : index
    %c0_3 = arith.constant 0 : index
    %4 = vector.load %arg3[%c0_2, %c0_3] : memref<16x32xf32, #tpu.memory_space<vmem>>, vector<16x32xf32>
    %c0_4 = arith.constant 0 : index
    %c0_5 = arith.constant 0 : index
    %5 = vector.load %arg4[%c0_4, %c0_5] : memref<32x96xf32, #tpu.memory_space<vmem>>, vector<32x96xf32>
    %cst = arith.constant dense<0.000000e+00> : vector<16x96xf32>
    %6 = tpu.matmul %4, %5, %cst {dimension_numbers = #tpu.dot_dimension_numbers<[1], [0], [0], [1], [0, 0, 1, 1], [], []>} : vector<16x32xf32>, vector<32x96xf32>, vector<16x96xf32> -> vector<16x96xf32>
    %7 = arith.addf %3, %6 : vector<16x96xf32>
    %c0_6 = arith.constant 0 : index
    %c0_7 = arith.constant 0 : index
    %8 = vector.load %arg7[%c0_6, %c0_7] : memref<16x96xf32, #tpu.memory_space<vmem>>, vector<16x96xf32>
    tpu.vector_store %arg7[%c0_6, %c0_7], %7 {strides = array<i32>} : memref<16x96xf32, #tpu.memory_space<vmem>>, vector<16x96xf32>,
    %c0_i32_8 = arith.constant 0 : i32
    %9 = arith.cmpi eq, %arg2, %c0_i32_8 : i32
    %10 = arith.extui %9 : i1 to i32
    %c0_i32_9 = arith.constant 0 : i32
    %11 = arith.cmpi ne, %10, %c0_i32_9 : i32
    scf.if %11 {
      %c0_10 = arith.constant 0 : index
      %c0_11 = arith.constant 0 : index
      %12 = vector.load %arg7[%c0_10, %c0_11] : memref<16x96xf32, #tpu.memory_space<vmem>>, vector<16x96xf32>
      %c0_12 = arith.constant 0 : index
      %c0_13 = arith.constant 0 : index
      %13 = vector.load %arg5[%c0_12, %c0_13] : memref<1x96xf32, #tpu.memory_space<vmem>>, vector<1x96xf32>
      %14 = vector.broadcast %13 : vector<1x96xf32> to vector<16x96xf32>
      %15 = arith.addf %12, %14 : vector<16x96xf32>
      %c0_14 = arith.constant 0 : index
      %c0_15 = arith.constant 0 : index
      %16 = vector.load %arg6[%c0_14, %c0_15] : memref<16x96xf32, #tpu.memory_space<vmem>>, vector<16x96xf32>
      tpu.vector_store %arg6[%c0_14, %c0_15], %15 {strides = array<i32>} : memref<16x96xf32, #tpu.memory_space<vmem>>, vector<16x96xf32>,
    } else {
    }
    return
  }
  func.func @transform_0(%arg0: i32, %arg1: i32, %arg2: i32) -> (i32, i32) {
    %c0_i32 = arith.constant 0 : i32
    return %arg0, %arg2 : i32, i32
  }
  func.func @transform_1(%arg0: i32, %arg1: i32, %arg2: i32) -> (i32, i32) {
    %c0_i32 = arith.constant 0 : i32
    return %arg2, %arg1 : i32, i32
  }
  func.func @transform_2(%arg0: i32, %arg1: i32, %arg2: i32) -> (i32, i32) {
    %c0_i32 = arith.constant 0 : i32
    %c0_i32_0 = arith.constant 0 : i32
    return %c0_i32, %arg1 : i32, i32
  }
  func.func @transform_3(%arg0: i32, %arg1: i32, %arg2: i32) -> (i32, i32) {
    %c0_i32 = arith.constant 0 : i32
    return %arg0, %arg1 : i32, i32
  }
}

module attributes {stable_mosaic.version = 11 : i64} {
  func.func @_attn_kernel(%arg0: i32, %arg1: memref<1x8x32xf32, #tpu.memory_space<vmem>>, %arg2: memref<1x8x32xf32, #tpu.memory_space<vmem>>, %arg3: memref<1x8x32xf32, #tpu.memory_space<vmem>>, %arg4: memref<1x8x8xf32, #tpu.memory_space<vmem>>, %arg5: memref<1x8x32xf32, #tpu.memory_space<vmem>>) attributes {dimension_semantics = [#tpu.dimension_semantics<parallel>], iteration_bounds = array<i64: 2>, scalar_prefetch = 0 : i64, scratch_operands = 0 : i64, tpu.core_type = #tpu.core_type<tc>, window_params = [{transform_indices = @transform_0, window_bounds = array<i64: 1, 8, 32>}, {transform_indices = @transform_1, window_bounds = array<i64: 1, 8, 32>}, {transform_indices = @transform_2, window_bounds = array<i64: 1, 8, 32>}, {transform_indices = @transform_3, window_bounds = array<i64: 1, 8, 8>}, {transform_indices = @transform_4, window_bounds = array<i64: 1, 8, 32>}]} {
    %c0 = arith.constant 0 : index
    %c0_0 = arith.constant 0 : index
    %c0_1 = arith.constant 0 : index
    %0 = vector.load %arg1[%c0, %c0_0, %c0_1] : memref<1x8x32xf32, #tpu.memory_space<vmem>>, vector<1x8x32xf32>
    %1 = vector.shape_cast %0 : vector<1x8x32xf32> to vector<8x32xf32>
    %c0_2 = arith.constant 0 : index
    %c0_3 = arith.constant 0 : index
    %c0_4 = arith.constant 0 : index
    %2 = vector.load %arg2[%c0_2, %c0_3, %c0_4] : memref<1x8x32xf32, #tpu.memory_space<vmem>>, vector<1x8x32xf32>
    %3 = vector.shape_cast %2 : vector<1x8x32xf32> to vector<8x32xf32>
    %c0_5 = arith.constant 0 : index
    %c0_6 = arith.constant 0 : index
    %c0_7 = arith.constant 0 : index
    %4 = vector.load %arg3[%c0_5, %c0_6, %c0_7] : memref<1x8x32xf32, #tpu.memory_space<vmem>>, vector<1x8x32xf32>
    %5 = vector.shape_cast %4 : vector<1x8x32xf32> to vector<8x32xf32>
    %c0_8 = arith.constant 0 : index
    %c0_9 = arith.constant 0 : index
    %c0_10 = arith.constant 0 : index
    %6 = vector.load %arg4[%c0_8, %c0_9, %c0_10] : memref<1x8x8xf32, #tpu.memory_space<vmem>>, vector<1x8x8xf32>
    %7 = vector.shape_cast %6 : vector<1x8x8xf32> to vector<8x8xf32>
    %8 = vector.extract_strided_slice %1 {offsets = [0, 0], sizes = [8, 8], strides = [1, 1]} : vector<8x32xf32> to vector<8x8xf32>
    %9 = vector.extract_strided_slice %3 {offsets = [0, 0], sizes = [8, 8], strides = [1, 1]} : vector<8x32xf32> to vector<8x8xf32>
    %10 = vector.extract_strided_slice %5 {offsets = [0, 0], sizes = [8, 8], strides = [1, 1]} : vector<8x32xf32> to vector<8x8xf32>
    %11 = tpu.transpose %9, [1, 0] : vector<8x8xf32> -> vector<8x8xf32>
    %cst = arith.constant dense<0.000000e+00> : vector<8x8xf32>
    %12 = tpu.matmul %8, %11, %cst {dimension_numbers = #tpu.dot_dimension_numbers<[1], [0], [0], [1], [0, 0, 1, 1], [], []>} : vector<8x8xf32>, vector<8x8xf32>, vector<8x8xf32> -> vector<8x8xf32>
    %cst_11 = arith.constant 0.353553385 : f32
    %13 = vector.broadcast %cst_11 : f32 to vector<8x8xf32>
    %14 = arith.mulf %12, %13 : vector<8x8xf32>
    %15 = arith.addf %14, %7 : vector<8x8xf32>
    %cst_12 = arith.constant dense<0xFF800000> : vector<8xf32>
    %16 = vector.multi_reduction <maximumf>, %15, %cst_12 [1] : vector<8x8xf32> to vector<8xf32>
    %17 = vector.shape_cast %16 : vector<8xf32> to vector<8x1xf32>
    %18 = vector.broadcast %17 : vector<8x1xf32> to vector<8x8xf32>
    %19 = arith.subf %15, %18 : vector<8x8xf32>
    %20 = math.exp %19 : vector<8x8xf32>
    %cst_13 = arith.constant dense<0.000000e+00> : vector<8xf32>
    %21 = vector.multi_reduction <add>, %20, %cst_13 [1] : vector<8x8xf32> to vector<8xf32>
    %22 = vector.shape_cast %21 : vector<8xf32> to vector<8x1xf32>
    %23 = tpu.reciprocal %22 {approx = true} : vector<8x1xf32> -> vector<8x1xf32>
    %24 = vector.broadcast %23 : vector<8x1xf32> to vector<8x8xf32>
    %25 = arith.mulf %20, %24 : vector<8x8xf32>
    %cst_14 = arith.constant dense<0.000000e+00> : vector<8x8xf32>
    %26 = tpu.matmul %25, %10, %cst_14 {dimension_numbers = #tpu.dot_dimension_numbers<[1], [0], [0], [1], [0, 0, 1, 1], [], []>} : vector<8x8xf32>, vector<8x8xf32>, vector<8x8xf32> -> vector<8x8xf32>
    %27 = vector.extract_strided_slice %1 {offsets = [0, 8], sizes = [8, 8], strides = [1, 1]} : vector<8x32xf32> to vector<8x8xf32>
    %28 = vector.extract_strided_slice %3 {offsets = [0, 8], sizes = [8, 8], strides = [1, 1]} : vector<8x32xf32> to vector<8x8xf32>
    %29 = vector.extract_strided_slice %5 {offsets = [0, 8], sizes = [8, 8], strides = [1, 1]} : vector<8x32xf32> to vector<8x8xf32>
    %30 = tpu.transpose %28, [1, 0] : vector<8x8xf32> -> vector<8x8xf32>
    %cst_15 = arith.constant dense<0.000000e+00> : vector<8x8xf32>
    %31 = tpu.matmul %27, %30, %cst_15 {dimension_numbers = #tpu.dot_dimension_numbers<[1], [0], [0], [1], [0, 0, 1, 1], [], []>} : vector<8x8xf32>, vector<8x8xf32>, vector<8x8xf32> -> vector<8x8xf32>
    %cst_16 = arith.constant 0.353553385 : f32
    %32 = vector.broadcast %cst_16 : f32 to vector<8x8xf32>
    %33 = arith.mulf %31, %32 : vector<8x8xf32>
    %34 = arith.addf %33, %7 : vector<8x8xf32>
    %cst_17 = arith.constant dense<0xFF800000> : vector<8xf32>
    %35 = vector.multi_reduction <maximumf>, %34, %cst_17 [1] : vector<8x8xf32> to vector<8xf32>
    %36 = vector.shape_cast %35 : vector<8xf32> to vector<8x1xf32>
    %37 = vector.broadcast %36 : vector<8x1xf32> to vector<8x8xf32>
    %38 = arith.subf %34, %37 : vector<8x8xf32>
    %39 = math.exp %38 : vector<8x8xf32>
    %cst_18 = arith.constant dense<0.000000e+00> : vector<8xf32>
    %40 = vector.multi_reduction <add>, %39, %cst_18 [1] : vector<8x8xf32> to vector<8xf32>
    %41 = vector.shape_cast %40 : vector<8xf32> to vector<8x1xf32>
    %42 = tpu.reciprocal %41 {approx = true} : vector<8x1xf32> -> vector<8x1xf32>
    %43 = vector.broadcast %42 : vector<8x1xf32> to vector<8x8xf32>
    %44 = arith.mulf %39, %43 : vector<8x8xf32>
    %cst_19 = arith.constant dense<0.000000e+00> : vector<8x8xf32>
    %45 = tpu.matmul %44, %29, %cst_19 {dimension_numbers = #tpu.dot_dimension_numbers<[1], [0], [0], [1], [0, 0, 1, 1], [], []>} : vector<8x8xf32>, vector<8x8xf32>, vector<8x8xf32> -> vector<8x8xf32>
    %46 = vector.extract_strided_slice %1 {offsets = [0, 16], sizes = [8, 8], strides = [1, 1]} : vector<8x32xf32> to vector<8x8xf32>
    %47 = vector.extract_strided_slice %3 {offsets = [0, 16], sizes = [8, 8], strides = [1, 1]} : vector<8x32xf32> to vector<8x8xf32>
    %48 = vector.extract_strided_slice %5 {offsets = [0, 16], sizes = [8, 8], strides = [1, 1]} : vector<8x32xf32> to vector<8x8xf32>
    %49 = tpu.transpose %47, [1, 0] : vector<8x8xf32> -> vector<8x8xf32>
    %cst_20 = arith.constant dense<0.000000e+00> : vector<8x8xf32>
    %50 = tpu.matmul %46, %49, %cst_20 {dimension_numbers = #tpu.dot_dimension_numbers<[1], [0], [0], [1], [0, 0, 1, 1], [], []>} : vector<8x8xf32>, vector<8x8xf32>, vector<8x8xf32> -> vector<8x8xf32>
    %cst_21 = arith.constant 0.353553385 : f32
    %51 = vector.broadcast %cst_21 : f32 to vector<8x8xf32>
    %52 = arith.mulf %50, %51 : vector<8x8xf32>
    %53 = arith.addf %52, %7 : vector<8x8xf32>
    %cst_22 = arith.constant dense<0xFF800000> : vector<8xf32>
    %54 = vector.multi_reduction <maximumf>, %53, %cst_22 [1] : vector<8x8xf32> to vector<8xf32>
    %55 = vector.shape_cast %54 : vector<8xf32> to vector<8x1xf32>
    %56 = vector.broadcast %55 : vector<8x1xf32> to vector<8x8xf32>
    %57 = arith.subf %53, %56 : vector<8x8xf32>
    %58 = math.exp %57 : vector<8x8xf32>
    %cst_23 = arith.constant dense<0.000000e+00> : vector<8xf32>
    %59 = vector.multi_reduction <add>, %58, %cst_23 [1] : vector<8x8xf32> to vector<8xf32>
    %60 = vector.shape_cast %59 : vector<8xf32> to vector<8x1xf32>
    %61 = tpu.reciprocal %60 {approx = true} : vector<8x1xf32> -> vector<8x1xf32>
    %62 = vector.broadcast %61 : vector<8x1xf32> to vector<8x8xf32>
    %63 = arith.mulf %58, %62 : vector<8x8xf32>
    %cst_24 = arith.constant dense<0.000000e+00> : vector<8x8xf32>
    %64 = tpu.matmul %63, %48, %cst_24 {dimension_numbers = #tpu.dot_dimension_numbers<[1], [0], [0], [1], [0, 0, 1, 1], [], []>} : vector<8x8xf32>, vector<8x8xf32>, vector<8x8xf32> -> vector<8x8xf32>
    %65 = vector.extract_strided_slice %1 {offsets = [0, 24], sizes = [8, 8], strides = [1, 1]} : vector<8x32xf32> to vector<8x8xf32>
    %66 = vector.extract_strided_slice %3 {offsets = [0, 24], sizes = [8, 8], strides = [1, 1]} : vector<8x32xf32> to vector<8x8xf32>
    %67 = vector.extract_strided_slice %5 {offsets = [0, 24], sizes = [8, 8], strides = [1, 1]} : vector<8x32xf32> to vector<8x8xf32>
    %68 = tpu.transpose %66, [1, 0] : vector<8x8xf32> -> vector<8x8xf32>
    %cst_25 = arith.constant dense<0.000000e+00> : vector<8x8xf32>
    %69 = tpu.matmul %65, %68, %cst_25 {dimension_numbers = #tpu.dot_dimension_numbers<[1], [0], [0], [1], [0, 0, 1, 1], [], []>} : vector<8x8xf32>, vector<8x8xf32>, vector<8x8xf32> -> vector<8x8xf32>
    %cst_26 = arith.constant 0.353553385 : f32
    %70 = vector.broadcast %cst_26 : f32 to vector<8x8xf32>
    %71 = arith.mulf %69, %70 : vector<8x8xf32>
    %72 = arith.addf %71, %7 : vector<8x8xf32>
    %cst_27 = arith.constant dense<0xFF800000> : vector<8xf32>
    %73 = vector.multi_reduction <maximumf>, %72, %cst_27 [1] : vector<8x8xf32> to vector<8xf32>
    %74 = vector.shape_cast %73 : vector<8xf32> to vector<8x1xf32>
    %75 = vector.broadcast %74 : vector<8x1xf32> to vector<8x8xf32>
    %76 = arith.subf %72, %75 : vector<8x8xf32>
    %77 = math.exp %76 : vector<8x8xf32>
    %cst_28 = arith.constant dense<0.000000e+00> : vector<8xf32>
    %78 = vector.multi_reduction <add>, %77, %cst_28 [1] : vector<8x8xf32> to vector<8xf32>
    %79 = vector.shape_cast %78 : vector<8xf32> to vector<8x1xf32>
    %80 = tpu.reciprocal %79 {approx = true} : vector<8x1xf32> -> vector<8x1xf32>
    %81 = vector.broadcast %80 : vector<8x1xf32> to vector<8x8xf32>
    %82 = arith.mulf %77, %81 : vector<8x8xf32>
    %cst_29 = arith.constant dense<0.000000e+00> : vector<8x8xf32>
    %83 = tpu.matmul %82, %67, %cst_29 {dimension_numbers = #tpu.dot_dimension_numbers<[1], [0], [0], [1], [0, 0, 1, 1], [], []>} : vector<8x8xf32>, vector<8x8xf32>, vector<8x8xf32> -> vector<8x8xf32>
    %84 = tpu.concatenate %26, %45, %64, %83 in 1 : vector<8x8xf32>, vector<8x8xf32>, vector<8x8xf32>, vector<8x8xf32> -> vector<8x32xf32>
    %c0_30 = arith.constant 0 : index
    %c0_31 = arith.constant 0 : index
    %c0_32 = arith.constant 0 : index
    %85 = vector.load %arg5[%c0_30, %c0_31, %c0_32] : memref<1x8x32xf32, #tpu.memory_space<vmem>>, vector<1x8x32xf32>
    %86 = vector.shape_cast %85 : vector<1x8x32xf32> to vector<8x32xf32>
    %87 = vector.shape_cast %84 : vector<8x32xf32> to vector<1x8x32xf32>
    tpu.vector_store %arg5[%c0_30, %c0_31, %c0_32], %87 {strides = array<i32>} : memref<1x8x32xf32, #tpu.memory_space<vmem>>, vector<1x8x32xf32>,
    return
  }
  func.func @transform_0(%arg0: i32) -> (i32, i32, i32) {
    %c0_i32 = arith.constant 0 : i32
    %c0_i32_0 = arith.constant 0 : i32
    %c0_i32_1 = arith.constant 0 : i32
    return %arg0, %c0_i32, %c0_i32_0 : i32, i32, i32
  }
  func.func @transform_1(%arg0: i32) -> (i32, i32, i32) {
    %c0_i32 = arith.constant 0 : i32
    %c0_i32_0 = arith.constant 0 : i32
    %c0_i32_1 = arith.constant 0 : i32
    return %arg0, %c0_i32, %c0_i32_0 : i32, i32, i32
  }
  func.func @transform_2(%arg0: i32) -> (i32, i32, i32) {
    %c0_i32 = arith.constant 0 : i32
    %c0_i32_0 = arith.constant 0 : i32
    %c0_i32_1 = arith.constant 0 : i32
    return %arg0, %c0_i32, %c0_i32_0 : i32, i32, i32
  }
  func.func @transform_3(%arg0: i32) -> (i32, i32, i32) {
    %c0_i32 = arith.constant 0 : i32
    %c0_i32_0 = arith.constant 0 : i32
    %c0_i32_1 = arith.constant 0 : i32
    return %arg0, %c0_i32, %c0_i32_0 : i32, i32, i32
  }
  func.func @transform_4(%arg0: i32) -> (i32, i32, i32) {
    %c0_i32 = arith.constant 0 : i32
    %c0_i32_0 = arith.constant 0 : i32
    %c0_i32_1 = arith.constant 0 : i32
    return %arg0, %c0_i32, %c0_i32_0 : i32, i32, i32
  }
}

module attributes {stable_mosaic.version = 11 : i64} {
  func.func @_dense_kernel(%arg0: i32, %arg1: i32, %arg2: i32, %arg3: memref<16x32xf32, #tpu.memory_space<vmem>>, %arg4: memref<32x64xf32, #tpu.memory_space<vmem>>, %arg5: memref<1x64xf32, #tpu.memory_space<vmem>>, %arg6: memref<16x64xf32, #tpu.memory_space<vmem>>, %arg7: memref<16x64xf32, #tpu.memory_space<vmem>>) attributes {dimension_semantics = [#tpu.dimension_semantics<parallel>, #tpu.dimension_semantics<parallel>, #tpu.dimension_semantics<arbitrary>], iteration_bounds = array<i64: 1, 1, 1>, scalar_prefetch = 0 : i64, scratch_operands = 1 : i64, tpu.core_type = #tpu.core_type<tc>, window_params = [{transform_indices = @transform_0, window_bounds = array<i64: 16, 32>}, {transform_indices = @transform_1, window_bounds = array<i64: 32, 64>}, {transform_indices = @transform_2, window_bounds = array<i64: 1, 64>}, {transform_indices = @transform_3, window_bounds = array<i64: 16, 64>}]} {
    %c0_i32 = arith.constant 0 : i32
    %0 = arith.cmpi eq, %arg2, %c0_i32 : i32
    %1 = arith.extui %0 : i1 to i32
    %c0_i32_0 = arith.constant 0 : i32
    %2 = arith.cmpi ne, %1, %c0_i32_0 : i32
    scf.if %2 {
      %cst_10 = arith.constant 0.000000e+00 : f32
      %12 = vector.broadcast %cst_10 : f32 to vector<16x64xf32>
      %c0_11 = arith.constant 0 : index
      %c0_12 = arith.constant 0 : index
      %13 = vector.load %arg7[%c0_11, %c0_12] : memref<16x64xf32, #tpu.memory_space<vmem>>, vector<16x64xf32>
      tpu.vector_store %arg7[%c0_11, %c0_12], %12 {strides = array<i32>} : memref<16x64xf32, #tpu.memory_space<vmem>>, vector<16x64xf32>,
    } else {
    }
    %c0 = arith.constant 0 : index
    %c0_1 = arith.constant 0 : index
    %3 = vector.load %arg7[%c0, %c0_1] : memref<16x64xf32, #tpu.memory_space<vmem>>, vector<16x64xf32>
    %c0_2 = arith.constant 0 : index
    %c0_3 = arith.constant 0 : index
    %4 = vector.load %arg3[%c0_2, %c0_3] : memref<16x32xf32, #tpu.memory_space<vmem>>, vector<16x32xf32>
    %c0_4 = arith.constant 0 : index
    %c0_5 = arith.constant 0 : index
    %5 = vector.load %arg4[%c0_4, %c0_5] : memref<32x64xf32, #tpu.memory_space<vmem>>, vector<32x64xf32>
    %cst = arith.constant dense<0.000000e+00> : vector<16x64xf32>
    %6 = tpu.matmul %4, %5, %cst {dimension_numbers = #tpu.dot_dimension_numbers<[1], [0], [0], [1], [0, 0, 1, 1], [], []>} : vector<16x32xf32>, vector<32x64xf32>, vector<16x64xf32> -> vector<16x64xf32>
    %7 = arith.addf %3, %6 : vector<16x64xf32>
    %c0_6 = arith.constant 0 : index
    %c0_7 = arith.constant 0 : index
    %8 = vector.load %arg7[%c0_6, %c0_7] : memref<16x64xf32, #tpu.memory_space<vmem>>, vector<16x64xf32>
    tpu.vector_store %arg7[%c0_6, %c0_7], %7 {strides = array<i32>} : memref<16x64xf32, #tpu.memory_space<vmem>>, vector<16x64xf32>,
    %c0_i32_8 = arith.constant 0 : i32
    %9 = arith.cmpi eq, %arg2, %c0_i32_8 : i32
    %10 = arith.extui %9 : i1 to i32
    %c0_i32_9 = arith.constant 0 : i32
    %11 = arith.cmpi ne, %10, %c0_i32_9 : i32
    scf.if %11 {
      %c0_10 = arith.constant 0 : index
      %c0_11 = arith.constant 0 : index
      %12 = vector.load %arg7[%c0_10, %c0_11] : memref<16x64xf32, #tpu.memory_space<vmem>>, vector<16x64xf32>
      %c0_12 = arith.constant 0 : index
      %c0_13 = arith.constant 0 : index
      %13 = vector.load %arg5[%c0_12, %c0_13] : memref<1x64xf32, #tpu.memory_space<vmem>>, vector<1x64xf32>
      %14 = vector.broadcast %13 : vector<1x64xf32> to vector<16x64xf32>
      %15 = arith.addf %12, %14 : vector<16x64xf32>
      %c0_14 = arith.constant 0 : index
      %c0_15 = arith.constant 0 : index
      %16 = vector.load %arg6[%c0_14, %c0_15] : memref<16x64xf32, #tpu.memory_space<vmem>>, vector<16x64xf32>
      tpu.vector_store %arg6[%c0_14, %c0_15], %15 {strides = array<i32>} : memref<16x64xf32, #tpu.memory_space<vmem>>, vector<16x64xf32>,
    } else {
    }
    return
  }
  func.func @transform_0(%arg0: i32, %arg1: i32, %arg2: i32) -> (i32, i32) {
    %c0_i32 = arith.constant 0 : i32
    return %arg0, %arg2 : i32, i32
  }
  func.func @transform_1(%arg0: i32, %arg1: i32, %arg2: i32) -> (i32, i32) {
    %c0_i32 = arith.constant 0 : i32
    return %arg2, %arg1 : i32, i32
  }
  func.func @transform_2(%arg0: i32, %arg1: i32, %arg2: i32) -> (i32, i32) {
    %c0_i32 = arith.constant 0 : i32
    %c0_i32_0 = arith.constant 0 : i32
    return %c0_i32, %arg1 : i32, i32
  }
  func.func @transform_3(%arg0: i32, %arg1: i32, %arg2: i32) -> (i32, i32) {
    %c0_i32 = arith.constant 0 : i32
    return %arg0, %arg1 : i32, i32
  }
}

module attributes {stable_mosaic.version = 11 : i64} {
  func.func @_dense_addln_kernel(%arg0: i32, %arg1: i32, %arg2: memref<16x64xf32, #tpu.memory_space<vmem>>, %arg3: memref<64x32xf32, #tpu.memory_space<vmem>>, %arg4: memref<1x32xf32, #tpu.memory_space<vmem>>, %arg5: memref<16x32xf32, #tpu.memory_space<vmem>>, %arg6: memref<1x32xf32, #tpu.memory_space<vmem>>, %arg7: memref<1x32xf32, #tpu.memory_space<vmem>>, %arg8: memref<16x32xf32, #tpu.memory_space<vmem>>, %arg9: memref<16x32xf32, #tpu.memory_space<vmem>>) attributes {dimension_semantics = [#tpu.dimension_semantics<parallel>, #tpu.dimension_semantics<arbitrary>], iteration_bounds = array<i64: 1, 1>, scalar_prefetch = 0 : i64, scratch_operands = 1 : i64, tpu.core_type = #tpu.core_type<tc>, window_params = [{transform_indices = @transform_0, window_bounds = array<i64: 16, 64>}, {transform_indices = @transform_1, window_bounds = array<i64: 64, 32>}, {pipeline_mode = #tpu.pipeline_mode<synchronous>, transform_indices = @transform_2, window_bounds = array<i64: 1, 32>}, {transform_indices = @transform_3, window_bounds = array<i64: 16, 32>}, {pipeline_mode = #tpu.pipeline_mode<synchronous>, transform_indices = @transform_4, window_bounds = array<i64: 1, 32>}, {pipeline_mode = #tpu.pipeline_mode<synchronous>, transform_indices = @transform_5, window_bounds = array<i64: 1, 32>}, {transform_indices = @transform_6, window_bounds = array<i64: 16, 32>}]} {
    %c0_i32 = arith.constant 0 : i32
    %0 = arith.cmpi eq, %arg1, %c0_i32 : i32
    %1 = arith.extui %0 : i1 to i32
    %c0_i32_0 = arith.constant 0 : i32
    %2 = arith.cmpi ne, %1, %c0_i32_0 : i32
    scf.if %2 {
      %cst_10 = arith.constant 0.000000e+00 : f32
      %12 = vector.broadcast %cst_10 : f32 to vector<16x32xf32>
      %c0_11 = arith.constant 0 : index
      %c0_12 = arith.constant 0 : index
      %13 = vector.load %arg9[%c0_11, %c0_12] : memref<16x32xf32, #tpu.memory_space<vmem>>, vector<16x32xf32>
      tpu.vector_store %arg9[%c0_11, %c0_12], %12 {strides = array<i32>} : memref<16x32xf32, #tpu.memory_space<vmem>>, vector<16x32xf32>,
    } else {
    }
    %c0 = arith.constant 0 : index
    %c0_1 = arith.constant 0 : index
    %3 = vector.load %arg9[%c0, %c0_1] : memref<16x32xf32, #tpu.memory_space<vmem>>, vector<16x32xf32>
    %c0_2 = arith.constant 0 : index
    %c0_3 = arith.constant 0 : index
    %4 = vector.load %arg2[%c0_2, %c0_3] : memref<16x64xf32, #tpu.memory_space<vmem>>, vector<16x64xf32>
    %c0_4 = arith.constant 0 : index
    %c0_5 = arith.constant 0 : index
    %5 = vector.load %arg3[%c0_4, %c0_5] : memref<64x32xf32, #tpu.memory_space<vmem>>, vector<64x32xf32>
    %cst = arith.constant dense<0.000000e+00> : vector<16x32xf32>
    %6 = tpu.matmul %4, %5, %cst {dimension_numbers = #tpu.dot_dimension_numbers<[1], [0], [0], [1], [0, 0, 1, 1], [], []>} : vector<16x64xf32>, vector<64x32xf32>, vector<16x32xf32> -> vector<16x32xf32>
    %7 = arith.addf %3, %6 : vector<16x32xf32>
    %c0_6 = arith.constant 0 : index
    %c0_7 = arith.constant 0 : index
    %8 = vector.load %arg9[%c0_6, %c0_7] : memref<16x32xf32, #tpu.memory_space<vmem>>, vector<16x32xf32>
    tpu.vector_store %arg9[%c0_6, %c0_7], %7 {strides = array<i32>} : memref<16x32xf32, #tpu.memory_space<vmem>>, vector<16x32xf32>,
    %c0_i32_8 = arith.constant 0 : i32
    %9 = arith.cmpi eq, %arg1, %c0_i32_8 : i32
    %10 = arith.extui %9 : i1 to i32
    %c0_i32_9 = arith.constant 0 : i32
    %11 = arith.cmpi ne, %10, %c0_i32_9 : i32
    scf.if %11 {
      %c0_10 = arith.constant 0 : index
      %c0_11 = arith.constant 0 : index
      %12 = vector.load %arg9[%c0_10, %c0_11] : memref<16x32xf32, #tpu.memory_space<vmem>>, vector<16x32xf32>
      %c0_12 = arith.constant 0 : index
      %c0_13 = arith.constant 0 : index
      %13 = vector.load %arg4[%c0_12, %c0_13] : memref<1x32xf32, #tpu.memory_space<vmem>>, vector<1x32xf32>
      %14 = vector.broadcast %13 : vector<1x32xf32> to vector<16x32xf32>
      %15 = arith.addf %12, %14 : vector<16x32xf32>
      %c0_14 = arith.constant 0 : index
      %c0_15 = arith.constant 0 : index
      %16 = vector.load %arg5[%c0_14, %c0_15] : memref<16x32xf32, #tpu.memory_space<vmem>>, vector<16x32xf32>
      %17 = arith.addf %15, %16 : vector<16x32xf32>
      %cst_16 = arith.constant dense<0.000000e+00> : vector<16xf32>
      %18 = vector.multi_reduction <add>, %17, %cst_16 [1] : vector<16x32xf32> to vector<16xf32>
      %19 = vector.shape_cast %18 : vector<16xf32> to vector<16x1xf32>
      %cst_17 = arith.constant 3.200000e+01 : f32
      %20 = vector.broadcast %cst_17 : f32 to vector<16x1xf32>
      %21 = arith.divf %19, %20 : vector<16x1xf32>
      %22 = vector.broadcast %21 : vector<16x1xf32> to vector<16x32xf32>
      %23 = arith.subf %17, %22 : vector<16x32xf32>
      %24 = arith.mulf %23, %23 : vector<16x32xf32>
      %cst_18 = arith.constant dense<0.000000e+00> : vector<16xf32>
      %25 = vector.multi_reduction <add>, %24, %cst_18 [1] : vector<16x32xf32> to vector<16xf32>
      %26 = vector.shape_cast %25 : vector<16xf32> to vector<16x1xf32>
      %cst_19 = arith.constant 3.200000e+01 : f32
      %27 = vector.broadcast %cst_19 : f32 to vector<16x1xf32>
      %28 = arith.divf %26, %27 : vector<16x1xf32>
      %cst_20 = arith.constant 9.99999974E-6 : f32
      %29 = vector.broadcast %cst_20 : f32 to vector<16x1xf32>
      %30 = arith.addf %28, %29 : vector<16x1xf32>
      %31 = math.rsqrt %30 : vector<16x1xf32>
      %32 = vector.broadcast %31 : vector<16x1xf32> to vector<16x32xf32>
      %33 = arith.mulf %23, %32 : vector<16x32xf32>
      %c0_21 = arith.constant 0 : index
      %c0_22 = arith.constant 0 : index
      %34 = vector.load %arg6[%c0_21, %c0_22] : memref<1x32xf32, #tpu.memory_space<vmem>>, vector<1x32xf32>
      %35 = vector.broadcast %34 : vector<1x32xf32> to vector<16x32xf32>
      %36 = arith.mulf %33, %35 : vector<16x32xf32>
      %c0_23 = arith.constant 0 : index
      %c0_24 = arith.constant 0 : index
      %37 = vector.load %arg7[%c0_23, %c0_24] : memref<1x32xf32, #tpu.memory_space<vmem>>, vector<1x32xf32>
      %38 = vector.broadcast %37 : vector<1x32xf32> to vector<16x32xf32>
      %39 = arith.addf %36, %38 : vector<16x32xf32>
      %c0_25 = arith.constant 0 : index
      %c0_26 = arith.constant 0 : index
      %40 = vector.load %arg8[%c0_25, %c0_26] : memref<16x32xf32, #tpu.memory_space<vmem>>, vector<16x32xf32>
      tpu.vector_store %arg8[%c0_25, %c0_26], %39 {strides = array<i32>} : memref<16x32xf32, #tpu.memory_space<vmem>>, vector<16x32xf32>,
    } else {
    }
    return
  }
  func.func @transform_0(%arg0: i32, %arg1: i32) -> (i32, i32) {
    %c0_i32 = arith.constant 0 : i32
    return %arg0, %arg1 : i32, i32
  }
  func.func @transform_1(%arg0: i32, %arg1: i32) -> (i32, i32) {
    %c0_i32 = arith.constant 0 : i32
    %c0_i32_0 = arith.constant 0 : i32
    return %arg1, %c0_i32 : i32, i32
  }
  func.func @transform_2(%arg0: i32, %arg1: i32) -> (i32, i32) {
    %c0_i32 = arith.constant 0 : i32
    %c0_i32_0 = arith.constant 0 : i32
    %c0_i32_1 = arith.constant 0 : i32
    return %c0_i32, %c0_i32_0 : i32, i32
  }
  func.func @transform_3(%arg0: i32, %arg1: i32) -> (i32, i32) {
    %c0_i32 = arith.constant 0 : i32
    %c0_i32_0 = arith.constant 0 : i32
    return %arg0, %c0_i32 : i32, i32
  }
  func.func @transform_4(%arg0: i32, %arg1: i32) -> (i32, i32) {
    %c0_i32 = arith.constant 0 : i32
    %c0_i32_0 = arith.constant 0 : i32
    %c0_i32_1 = arith.constant 0 : i32
    return %c0_i32, %c0_i32_0 : i32, i32
  }
  func.func @transform_5(%arg0: i32, %arg1: i32) -> (i32, i32) {
    %c0_i32 = arith.constant 0 : i32
    %c0_i32_0 = arith.constant 0 : i32
    %c0_i32_1 = arith.constant 0 : i32
    return %c0_i32, %c0_i32_0 : i32, i32
  }
  func.func @transform_6(%arg0: i32, %arg1: i32) -> (i32, i32) {
    %c0_i32 = arith.constant 0 : i32
    %c0_i32_0 = arith.constant 0 : i32
    return %arg0, %c0_i32 : i32, i32
  }
}

module attributes {stable_mosaic.version = 11 : i64} {
  func.func @_dense_kernel(%arg0: i32, %arg1: i32, %arg2: i32, %arg3: memref<16x32xf32, #tpu.memory_space<vmem>>, %arg4: memref<32x50xf32, #tpu.memory_space<vmem>>, %arg5: memref<1x50xf32, #tpu.memory_space<vmem>>, %arg6: memref<16x50xf32, #tpu.memory_space<vmem>>, %arg7: memref<16x50xf32, #tpu.memory_space<vmem>>) attributes {dimension_semantics = [#tpu.dimension_semantics<parallel>, #tpu.dimension_semantics<parallel>, #tpu.dimension_semantics<arbitrary>], iteration_bounds = array<i64: 1, 1, 1>, scalar_prefetch = 0 : i64, scratch_operands = 1 : i64, tpu.core_type = #tpu.core_type<tc>, window_params = [{transform_indices = @transform_0, window_bounds = array<i64: 16, 32>}, {transform_indices = @transform_1, window_bounds = array<i64: 32, 50>}, {transform_indices = @transform_2, window_bounds = array<i64: 1, 50>}, {transform_indices = @transform_3, window_bounds = array<i64: 16, 50>}]} {
    %c0_i32 = arith.constant 0 : i32
    %0 = arith.cmpi eq, %arg2, %c0_i32 : i32
    %1 = arith.extui %0 : i1 to i32
    %c0_i32_0 = arith.constant 0 : i32
    %2 = arith.cmpi ne, %1, %c0_i32_0 : i32
    scf.if %2 {
      %cst_10 = arith.constant 0.000000e+00 : f32
      %12 = vector.broadcast %cst_10 : f32 to vector<16x50xf32>
      %c0_11 = arith.constant 0 : index
      %c0_12 = arith.constant 0 : index
      %13 = vector.load %arg7[%c0_11, %c0_12] : memref<16x50xf32, #tpu.memory_space<vmem>>, vector<16x50xf32>
      tpu.vector_store %arg7[%c0_11, %c0_12], %12 {strides = array<i32>} : memref<16x50xf32, #tpu.memory_space<vmem>>, vector<16x50xf32>,
    } else {
    }
    %c0 = arith.constant 0 : index
    %c0_1 = arith.constant 0 : index
    %3 = vector.load %arg7[%c0, %c0_1] : memref<16x50xf32, #tpu.memory_space<vmem>>, vector<16x50xf32>
    %c0_2 = arith.constant 0 : index
    %c0_3 = arith.constant 0 : index
    %4 = vector.load %arg3[%c0_2, %c0_3] : memref<16x32xf32, #tpu.memory_space<vmem>>, vector<16x32xf32>
    %c0_4 = arith.constant 0 : index
    %c0_5 = arith.constant 0 : index
    %5 = vector.load %arg4[%c0_4, %c0_5] : memref<32x50xf32, #tpu.memory_space<vmem>>, vector<32x50xf32>
    %cst = arith.constant dense<0.000000e+00> : vector<16x50xf32>
    %6 = tpu.matmul %4, %5, %cst {dimension_numbers = #tpu.dot_dimension_numbers<[1], [0], [0], [1], [0, 0, 1, 1], [], []>} : vector<16x32xf32>, vector<32x50xf32>, vector<16x50xf32> -> vector<16x50xf32>
    %7 = arith.addf %3, %6 : vector<16x50xf32>
    %c0_6 = arith.constant 0 : index
    %c0_7 = arith.constant 0 : index
    %8 = vector.load %arg7[%c0_6, %c0_7] : memref<16x50xf32, #tpu.memory_space<vmem>>, vector<16x50xf32>
    tpu.vector_store %arg7[%c0_6, %c0_7], %7 {strides = array<i32>} : memref<16x50xf32, #tpu.memory_space<vmem>>, vector<16x50xf32>,
    %c0_i32_8 = arith.constant 0 : i32
    %9 = arith.cmpi eq, %arg2, %c0_i32_8 : i32
    %10 = arith.extui %9 : i1 to i32
    %c0_i32_9 = arith.constant 0 : i32
    %11 = arith.cmpi ne, %10, %c0_i32_9 : i32
    scf.if %11 {
      %c0_10 = arith.constant 0 : index
      %c0_11 = arith.constant 0 : index
      %12 = vector.load %arg7[%c0_10, %c0_11] : memref<16x50xf32, #tpu.memory_space<vmem>>, vector<16x50xf32>
      %c0_12 = arith.constant 0 : index
      %c0_13 = arith.constant 0 : index
      %13 = vector.load %arg5[%c0_12, %c0_13] : memref<1x50xf32, #tpu.memory_space<vmem>>, vector<1x50xf32>
      %14 = vector.broadcast %13 : vector<1x50xf32> to vector<16x50xf32>
      %15 = arith.addf %12, %14 : vector<16x50xf32>
      %c0_14 = arith.constant 0 : index
      %c0_15 = arith.constant 0 : index
      %16 = vector.load %arg6[%c0_14, %c0_15] : memref<16x50xf32, #tpu.memory_space<vmem>>, vector<16x50xf32>
      tpu.vector_store %arg6[%c0_14, %c0_15], %15 {strides = array<i32>} : memref<16x50xf32, #tpu.memory_space<vmem>>, vector<16x50xf32>,
    } else {
    }
    return
  }
  func.func @transform_0(%arg0: i32, %arg1: i32, %arg2: i32) -> (i32, i32) {
    %c0_i32 = arith.constant 0 : i32
    return %arg0, %arg2 : i32, i32
  }
  func.func @transform_1(%arg0: i32, %arg1: i32, %arg2: i32) -> (i32, i32) {
    %c0_i32 = arith.constant 0 : i32
    return %arg2, %arg1 : i32, i32
  }
  func.func @transform_2(%arg0: i32, %arg1: i32, %arg2: i32) -> (i32, i32) {
    %c0_i32 = arith.constant 0 : i32
    %c0_i32_0 = arith.constant 0 : i32
    return %c0_i32, %arg1 : i32, i32
  }
  func.func @transform_3(%arg0: i32, %arg1: i32, %arg2: i32) -> (i32, i32) {
    %c0_i32 = arith.constant 0 : i32
    return %arg0, %arg1 : i32, i32
  }
}

module attributes {stable_mosaic.version = 11 : i64} {
  func.func @_dense_kernel(%arg0: i32, %arg1: i32, %arg2: i32, %arg3: memref<16x32xf32, #tpu.memory_space<vmem>>, %arg4: memref<32x32xf32, #tpu.memory_space<vmem>>, %arg5: memref<1x32xf32, #tpu.memory_space<vmem>>, %arg6: memref<16x32xf32, #tpu.memory_space<vmem>>, %arg7: memref<16x32xf32, #tpu.memory_space<vmem>>) attributes {dimension_semantics = [#tpu.dimension_semantics<parallel>, #tpu.dimension_semantics<parallel>, #tpu.dimension_semantics<arbitrary>], iteration_bounds = array<i64: 1, 1, 1>, scalar_prefetch = 0 : i64, scratch_operands = 1 : i64, tpu.core_type = #tpu.core_type<tc>, window_params = [{transform_indices = @transform_0, window_bounds = array<i64: 16, 32>}, {transform_indices = @transform_1, window_bounds = array<i64: 32, 32>}, {transform_indices = @transform_2, window_bounds = array<i64: 1, 32>}, {transform_indices = @transform_3, window_bounds = array<i64: 16, 32>}]} {
    %c0_i32 = arith.constant 0 : i32
    %0 = arith.cmpi eq, %arg2, %c0_i32 : i32
    %1 = arith.extui %0 : i1 to i32
    %c0_i32_0 = arith.constant 0 : i32
    %2 = arith.cmpi ne, %1, %c0_i32_0 : i32
    scf.if %2 {
      %cst_10 = arith.constant 0.000000e+00 : f32
      %12 = vector.broadcast %cst_10 : f32 to vector<16x32xf32>
      %c0_11 = arith.constant 0 : index
      %c0_12 = arith.constant 0 : index
      %13 = vector.load %arg7[%c0_11, %c0_12] : memref<16x32xf32, #tpu.memory_space<vmem>>, vector<16x32xf32>
      tpu.vector_store %arg7[%c0_11, %c0_12], %12 {strides = array<i32>} : memref<16x32xf32, #tpu.memory_space<vmem>>, vector<16x32xf32>,
    } else {
    }
    %c0 = arith.constant 0 : index
    %c0_1 = arith.constant 0 : index
    %3 = vector.load %arg7[%c0, %c0_1] : memref<16x32xf32, #tpu.memory_space<vmem>>, vector<16x32xf32>
    %c0_2 = arith.constant 0 : index
    %c0_3 = arith.constant 0 : index
    %4 = vector.load %arg3[%c0_2, %c0_3] : memref<16x32xf32, #tpu.memory_space<vmem>>, vector<16x32xf32>
    %c0_4 = arith.constant 0 : index
    %c0_5 = arith.constant 0 : index
    %5 = vector.load %arg4[%c0_4, %c0_5] : memref<32x32xf32, #tpu.memory_space<vmem>>, vector<32x32xf32>
    %cst = arith.constant dense<0.000000e+00> : vector<16x32xf32>
    %6 = tpu.matmul %4, %5, %cst {dimension_numbers = #tpu.dot_dimension_numbers<[1], [0], [0], [1], [0, 0, 1, 1], [], []>} : vector<16x32xf32>, vector<32x32xf32>, vector<16x32xf32> -> vector<16x32xf32>
    %7 = arith.addf %3, %6 : vector<16x32xf32>
    %c0_6 = arith.constant 0 : index
    %c0_7 = arith.constant 0 : index
    %8 = vector.load %arg7[%c0_6, %c0_7] : memref<16x32xf32, #tpu.memory_space<vmem>>, vector<16x32xf32>
    tpu.vector_store %arg7[%c0_6, %c0_7], %7 {strides = array<i32>} : memref<16x32xf32, #tpu.memory_space<vmem>>, vector<16x32xf32>,
    %c0_i32_8 = arith.constant 0 : i32
    %9 = arith.cmpi eq, %arg2, %c0_i32_8 : i32
    %10 = arith.extui %9 : i1 to i32
    %c0_i32_9 = arith.constant 0 : i32
    %11 = arith.cmpi ne, %10, %c0_i32_9 : i32
    scf.if %11 {
      %c0_10 = arith.constant 0 : index
      %c0_11 = arith.constant 0 : index
      %12 = vector.load %arg7[%c0_10, %c0_11] : memref<16x32xf32, #tpu.memory_space<vmem>>, vector<16x32xf32>
      %c0_12 = arith.constant 0 : index
      %c0_13 = arith.constant 0 : index
      %13 = vector.load %arg5[%c0_12, %c0_13] : memref<1x32xf32, #tpu.memory_space<vmem>>, vector<1x32xf32>
      %14 = vector.broadcast %13 : vector<1x32xf32> to vector<16x32xf32>
      %15 = arith.addf %12, %14 : vector<16x32xf32>
      %c0_14 = arith.constant 0 : index
      %c0_15 = arith.constant 0 : index
      %16 = vector.load %arg6[%c0_14, %c0_15] : memref<16x32xf32, #tpu.memory_space<vmem>>, vector<16x32xf32>
      tpu.vector_store %arg6[%c0_14, %c0_15], %15 {strides = array<i32>} : memref<16x32xf32, #tpu.memory_space<vmem>>, vector<16x32xf32>,
    } else {
    }
    return
  }
  func.func @transform_0(%arg0: i32, %arg1: i32, %arg2: i32) -> (i32, i32) {
    %c0_i32 = arith.constant 0 : i32
    return %arg0, %arg2 : i32, i32
  }
  func.func @transform_1(%arg0: i32, %arg1: i32, %arg2: i32) -> (i32, i32) {
    %c0_i32 = arith.constant 0 : i32
    return %arg2, %arg1 : i32, i32
  }
  func.func @transform_2(%arg0: i32, %arg1: i32, %arg2: i32) -> (i32, i32) {
    %c0_i32 = arith.constant 0 : i32
    %c0_i32_0 = arith.constant 0 : i32
    return %c0_i32, %arg1 : i32, i32
  }
  func.func @transform_3(%arg0: i32, %arg1: i32, %arg2: i32) -> (i32, i32) {
    %c0_i32 = arith.constant 0 : i32
    return %arg0, %arg1 : i32, i32
  }
}

</mosaic_0001>

<bundles_post_ra>
// kernel: transformer_forward.34
= control target key start
LH: loop header
LB: loop body
LE: loop exit
PB: predicated region body
PF: predicated region fallthrough
CT: control target
= control target key end

     0   :  { %vm29_vm0 = vcmask 261120   ;;  %vm18_vm1 = vcmask 523264   ;;  %v167_v3 = vmov 0.0   ;;  %s223_s1 = inlined_call_operand.vmem [shape: f32[32,64], index: 1, kind: input, shape index: {}]   ;;  %s224_s0 = inlined_call_operand.vmem [shape: f32[16,32], index: 0, kind: input, shape index: {}]   ;;  %s225_s2 = inlined_call_operand.vmem [shape: f32[1,64], index: 2, kind: input, shape index: {}]   ;;  %s226_s3 = inlined_call_operand.vmem [shape: f32[16,64], index: 3, kind: output, shape index: {}]  }
   0x1   :  { %v25_v0 = vld [vmem:[%s223_s1] sm:$0xff]  ;;  %v26_v1 = vld [vmem:[%s223_s1 + $0x8] sm:$0xff]  ;;  %v27_v2 = vld [vmem:[%s223_s1 + $0x10] sm:$0xff]  ;;  %20 = vst.msk [vmem:[#allocation2 + $0x8] sm:$0xff] %vm18_vm1, %v167_v3 }
   0x2   :  { %19 = vst.msk [vmem:[#allocation2] sm:$0xff] %vm18_vm1, %v167_v3  ;;  %v158_v4 = vpack.c.bf16 %v26_v1, %v25_v0  ;;  %v28_v5 = vld [vmem:[%s223_s1 + $0x18] sm:$0xff]  ;;  %v23_v6 = vld [vmem:[%s224_s0] sm:$0xff]  ;;  %v24_v8 = vld [vmem:[%s224_s0 + $0x8] sm:$0xff] }
   0x3   :  { %v162_v7 = vpack.c.bf16 %v28_v5, %v27_v2  ;;  %155 = vmatprep.mubr.msk.f32.mxu0 %vm29_vm0, %v23_v6  ;;  %v140_v15 = vld [vmem:[%s225_s2] ss:$0 sm:$0xff] }
   0x4   :  { %159 = vmatprep.subr.bf16.mxu0 %v158_v4 }
   0x5   :  { %161 = vmatpush3.bf16.msra.mxu0 %v158_v4 }
   0x6   :  { %163 = vmatprep.subr.bf16.mxu0 %v162_v7 }
   0x8   :  { %v22_v9 = vld [vmem:[#allocation2 + $0x8] sm:$0xff] }
   0x9   :  { %165 = vmatpush3.bf16.msra.mxu0 %v162_v7  ;;  %v21_v10 = vld [vmem:[#allocation2] sm:$0xff] }
   0xc   :  { %156 = vmatmul.mubr.msk.f32.vlgmr.msra.gmra.mrb[0].mxu0 %vm29_vm0, %v24_v8 }
  0xdf   :  { %v157_v11 = vpop.f32.mrb[0].mxu0 }
  0xe0   :  { %v112_v12 = vadd.f32 %v157_v11, %v22_v9  ;;  %v102_v13 = vpop.f32.mrb[1].mxu0 }
  0xe1   :  { %v111_v14 = vadd.f32 %v102_v13, %v21_v10 }
  0xe2   :  { %115 = vst.msk [vmem:[#allocation2 + $0x8] sm:$0xff] %vm18_vm1, %v112_v12 }
  0xe3   :  { %114 = vst.msk [vmem:[#allocation2] sm:$0xff] %vm18_vm1, %v111_v14 }
  0xe9   :  { %v120_v16 = vld [vmem:[#allocation2 + $0x8] sm:$0xff] }
  0xea   :  { %v129_v17 = vadd.f32 %v140_v15, %v120_v16  ;;  %v119_v18 = vld [vmem:[#allocation2] sm:$0xff] }
  0xeb   :  { %v128_v19 = vadd.f32 %v140_v15, %v119_v18 }
  0xec   :  { %v131_v20 = vmax.f32 %v129_v17, 0.0 }
  0xed   :  { %v130_v21 = vmax.f32 %v128_v19, 0.0 }
  0xee   :  { %133 = vst.msk [vmem:[%s226_s3 + $0x8] sm:$0xff] %vm18_vm1, %v131_v20 }
  0xef   :  { %132 = vst.msk [vmem:[%s226_s3] sm:$0xff] %vm18_vm1, %v130_v21 }

// kernel: transformer_forward.30
= control target key start
LH: loop header
LB: loop body
LE: loop exit
PB: predicated region body
PF: predicated region fallthrough
CT: control target
= control target key end

     0   :  { %vm27_vm0 = vcmask 261120   ;;  %v228_v3 = vmov 0.0   ;;  %s315_s1 = inlined_call_operand.vmem [shape: f32[32,32], index: 1, kind: input, shape index: {}]   ;;  %s316_s0 = inlined_call_operand.vmem [shape: f32[16,32], index: 0, kind: input, shape index: {}]   ;;  %s317_s2 = inlined_call_operand.vmem [shape: f32[1,32], index: 2, kind: input, shape index: {}]   ;;  %s318_s3 = inlined_call_operand.vmem [shape: f32[16,32], index: 3, kind: input, shape index: {}]   ;;  %s319_s4 = inlined_call_operand.vmem [shape: f32[1,32], index: 4, kind: input, shape index: {}]   ;;  %s320_s5 = inlined_call_operand.vmem [shape: f32[1,32], index: 5, kind: input, shape index: {}]   ;;  %s321_s6 = inlined_call_operand.vmem [shape: f32[16,32], index: 6, kind: output, shape index: {}]  }
   0x1   :  { %v34_v0 = vld [vmem:[%s315_s1] sm:$0xff]  ;;  %v35_v1 = vld [vmem:[%s315_s1 + $0x8] sm:$0xff]  ;;  %v36_v2 = vld [vmem:[%s315_s1 + $0x10] sm:$0xff]  ;;  %29 = vst.msk [vmem:[#allocation2 + $0x8] sm:$0xff] %vm27_vm0, %v228_v3 }
   0x2   :  { %28 = vst.msk [vmem:[#allocation2] sm:$0xff] %vm27_vm0, %v228_v3  ;;  %v215_v4 = vpack.c.bf16 %v35_v1, %v34_v0  ;;  %v37_v5 = vld [vmem:[%s315_s1 + $0x18] sm:$0xff]  ;;  %v32_v6 = vld [vmem:[%s316_s0] sm:$0xff]  ;;  %v33_v8 = vld [vmem:[%s316_s0 + $0x8] sm:$0xff] }
   0x3   :  { %v219_v7 = vpack.c.bf16 %v37_v5, %v36_v2  ;;  %212 = vmatprep.mubr.msk.f32.mxu0 %vm27_vm0, %v32_v6  ;;  %v195_v15 = vld [vmem:[%s317_s2] ss:$0 sm:$0xff]  ;;  %v139_v21 = vld [vmem:[%s318_s3 + $0x8] sm:$0xff] }
   0x4   :  { %216 = vmatprep.subr.bf16.mxu0 %v215_v4  ;;  %v138_v18 = vld [vmem:[%s318_s3] sm:$0xff] }
   0x5   :  { %218 = vmatpush3.bf16.msra.mxu0 %v215_v4  ;;  %v196_v43 = vld [vmem:[%s319_s4] ss:$0 sm:$0xff] }
   0x6   :  { %220 = vmatprep.subr.bf16.mxu0 %v219_v7  ;;  %v197_v45 = vld [vmem:[%s320_s5] ss:$0 sm:$0xff] }
   0x8   :  { %v31_v9 = vld [vmem:[#allocation2 + $0x8] sm:$0xff] }
   0x9   :  { %222 = vmatpush3.bf16.msra.mxu0 %v219_v7  ;;  %v30_v10 = vld [vmem:[#allocation2] sm:$0xff] }
   0xc   :  { %213 = vmatmul.mubr.msk.f32.vlgmr.msra.gmra.mrb[0].mxu0 %vm27_vm0, %v33_v8 }
  0xdf   :  { %v214_v11 = vpop.f32.mrb[0].mxu0 }
  0xe0   :  { %v121_v12 = vadd.f32 %v214_v11, %v31_v9  ;;  %v111_v13 = vpop.f32.mrb[1].mxu0 }
  0xe1   :  { %v120_v14 = vadd.f32 %v111_v13, %v30_v10 }
  0xe2   :  { %123 = vst.msk [vmem:[#allocation2 + $0x8] sm:$0xff] %vm27_vm0, %v121_v12 }
  0xe3   :  { %122 = vst.msk [vmem:[#allocation2] sm:$0xff] %vm27_vm0, %v120_v14 }
  0xe9   :  { %v128_v16 = vld [vmem:[#allocation2 + $0x8] sm:$0xff] }
  0xea   :  { %v127_v17 = vld [vmem:[#allocation2] sm:$0xff]  ;;  %v137_v20 = vadd.f32 %v195_v15, %v128_v16 }
  0xeb   :  { %v136_v19 = vadd.f32 %v195_v15, %v127_v17 }
  0xec   :  { %v141_v24 = vadd.f32 %v139_v21, %v137_v20 }
  0xed   :  { %v140_v22 = vadd.f32 %v138_v18, %v136_v19 }
  0xee   :  { %v145_v25 = vsel %vm27_vm0, %v141_v24, 0.0 }
  0xef   :  { %v142_v23 = vsel %vm27_vm0, %v140_v22, 0.0 }
  0xf0   :  { %143 = vadd.xlane.f32.xlu0 %v142_v23 }
  0xf4   :  { %146 = vadd.xlane.f32.xlu0 %v145_v25 }
 0x17d   :  { %v144_v26 = vpop.xlane.xlu0 %143 }
 0x17e   :  { %v149_v27 = vmul.f32 0.03125, %v144_v26 }
 0x180   :  { %v151_v28 = vsub.f32 %v140_v22, %v149_v27 }
 0x181   :  { %v147_v29 = vpop.xlane.xlu0 %146 }
 0x182   :  { %v150_v30 = vmul.f32 0.03125, %v147_v29  ;;  %v153_v31 = vmul.f32 %v151_v28, %v151_v28 }
 0x184   :  { %v152_v32 = vsub.f32 %v141_v24, %v150_v30  ;;  %v155_v33 = vsel %vm27_vm0, %v153_v31, 0.0 }
 0x185   :  { %156 = vadd.xlane.f32.xlu1 %v155_v33 }
 0x186   :  { %v154_v34 = vmul.f32 %v152_v32, %v152_v32 }
 0x188   :  { %v158_v35 = vsel %vm27_vm0, %v154_v34, 0.0 }
 0x189   :  { %159 = vadd.xlane.f32.xlu1 %v158_v35 }
 0x212   :  { %v157_v36 = vpop.xlane.xlu1 %156 }
 0x213   :  { %v161_v37 = vmul.f32 0.03125, %v157_v36 }
 0x215   :  { %v163_v38 = vadd.f32 1e-05, %v161_v37 }
 0x216   :  { %v160_v39 = vpop.xlane.xlu1 %159 }
 0x217   :  { %224 = vrsqrt.f32 %v163_v38  ;;  %v162_v40 = vmul.f32 0.03125, %v160_v39 }
 0x219   :  { %v164_v41 = vadd.f32 1e-05, %v162_v40 }
 0x21b   :  { %226 = vrsqrt.f32 %v164_v41 }
 0x221   :  { %v225_v42 = vpop.eup %224 }
 0x222   :  { %v167_v44 = vmul.f32 %v225_v42, %v151_v28 }
 0x224   :  { %v176_v46 = vmul.f32 %v196_v43, %v167_v44 }
 0x225   :  { %v227_v47 = vpop.eup %226 }
 0x226   :  { %v185_v48 = vadd.f32 %v197_v45, %v176_v46  ;;  %v168_v49 = vmul.f32 %v227_v47, %v152_v32 }
 0x228   :  { %187 = vst.msk [vmem:[%s321_s6] sm:$0xff] %vm27_vm0, %v185_v48  ;;  %v177_v50 = vmul.f32 %v196_v43, %v168_v49 }
 0x22a   :  { %v186_v51 = vadd.f32 %v197_v45, %v177_v50 }
 0x22c   :  { %188 = vst.msk [vmem:[%s321_s6 + $0x8] sm:$0xff] %vm27_vm0, %v186_v51 }

// kernel: transformer_forward.31
= control target key start
LH: loop header
LB: loop body
LE: loop exit
PB: predicated region body
PF: predicated region fallthrough
CT: control target
= control target key end

     0   :  { %vm29_vm0 = vcmask 261120   ;;  %vm18_vm1 = vcmask 785408   ;;  %v165_v3 = vmov 0.0   ;;  %s221_s1 = inlined_call_operand.vmem [shape: f32[32,96], index: 1, kind: input, shape index: {}]   ;;  %s222_s0 = inlined_call_operand.vmem [shape: f32[16,32], index: 0, kind: input, shape index: {}]   ;;  %s223_s2 = inlined_call_operand.vmem [shape: f32[1,96], index: 2, kind: input, shape index: {}]   ;;  %s224_s3 = inlined_call_operand.vmem [shape: f32[16,96], index: 3, kind: output, shape index: {}]  }
   0x1   :  { %v25_v0 = vld [vmem:[%s221_s1] sm:$0xff]  ;;  %v26_v1 = vld [vmem:[%s221_s1 + $0x8] sm:$0xff]  ;;  %v27_v2 = vld [vmem:[%s221_s1 + $0x10] sm:$0xff]  ;;  %20 = vst.msk [vmem:[#allocation2 + $0x8] sm:$0xff] %vm18_vm1, %v165_v3 }
   0x2   :  { %19 = vst.msk [vmem:[#allocation2] sm:$0xff] %vm18_vm1, %v165_v3  ;;  %v156_v4 = vpack.c.bf16 %v26_v1, %v25_v0  ;;  %v28_v5 = vld [vmem:[%s221_s1 + $0x18] sm:$0xff]  ;;  %v23_v6 = vld [vmem:[%s222_s0] sm:$0xff]  ;;  %v24_v8 = vld [vmem:[%s222_s0 + $0x8] sm:$0xff] }
   0x3   :  { %v160_v7 = vpack.c.bf16 %v28_v5, %v27_v2  ;;  %153 = vmatprep.mubr.msk.f32.mxu0 %vm29_vm0, %v23_v6  ;;  %v138_v15 = vld [vmem:[%s223_s2] ss:$0 sm:$0xff] }
   0x4   :  { %157 = vmatprep.subr.bf16.mxu0 %v156_v4 }
   0x5   :  { %159 = vmatpush3.bf16.msra.mxu0 %v156_v4 }
   0x6   :  { %161 = vmatprep.subr.bf16.mxu0 %v160_v7 }
   0x8   :  { %v22_v9 = vld [vmem:[#allocation2 + $0x8] sm:$0xff] }
   0x9   :  { %163 = vmatpush3.bf16.msra.mxu0 %v160_v7  ;;  %v21_v10 = vld [vmem:[#allocation2] sm:$0xff] }
   0xc   :  { %154 = vmatmul.mubr.msk.f32.vlgmr.msra.gmra.mrb[0].mxu0 %vm29_vm0, %v24_v8 }
  0xdf   :  { %v155_v11 = vpop.f32.mrb[0].mxu0 }
  0xe0   :  { %v112_v12 = vadd.f32 %v155_v11, %v22_v9  ;;  %v102_v13 = vpop.f32.mrb[1].mxu0 }
  0xe1   :  { %v111_v14 = vadd.f32 %v102_v13, %v21_v10 }
  0xe2   :  { %115 = vst.msk [vmem:[#allocation2 + $0x8] sm:$0xff] %vm18_vm1, %v112_v12 }
  0xe3   :  { %114 = vst.msk [vmem:[#allocation2] sm:$0xff] %vm18_vm1, %v111_v14 }
  0xe9   :  { %v120_v16 = vld [vmem:[#allocation2 + $0x8] sm:$0xff] }
  0xea   :  { %v129_v17 = vadd.f32 %v138_v15, %v120_v16  ;;  %v119_v18 = vld [vmem:[#allocation2] sm:$0xff] }
  0xeb   :  { %v128_v19 = vadd.f32 %v138_v15, %v119_v18 }
  0xec   :  { %131 = vst.msk [vmem:[%s224_s3 + $0x8] sm:$0xff] %vm18_vm1, %v129_v17 }
  0xed   :  { %130 = vst.msk [vmem:[%s224_s3] sm:$0xff] %vm18_vm1, %v128_v19 }

// kernel: transformer_forward.32
= control target key start
LH: loop header
LB: loop body
LE: loop exit
PB: predicated region body
PF: predicated region fallthrough
CT: control target
= control target key end

     0   :  { %s1174_s15 = smov 0   ;;  %s1276_s0 = inlined_call_operand.vmem [shape: f32[2,8,32], index: 0, kind: input, shape index: {}]   ;;  %s1277_s1 = inlined_call_operand.vmem [shape: f32[2,8,32], index: 1, kind: input, shape index: {}]   ;;  %s1278_s2 = inlined_call_operand.vmem [shape: f32[2,8,32], index: 2, kind: input, shape index: {}]   ;;  %s1279_s3 = inlined_call_operand.vmem [shape: f32[2,8,8], index: 3, kind: input, shape index: {}]   ;;  %s1280_s4 = inlined_call_operand.vmem [shape: f32[2,8,32], index: 4, kind: output, shape index: {}]  }
   0x1 LB: > { %s1021_s16 = sadd.s32 4294967295, %s1139_s15   ;;  %p1025_p0 = scmp.ge.s32.totalorder %s1139_s15, 1  ;;  %s1139_s15 = sphi %s1174_s15, %s14_s15  }
   0x2   : > { %p188_p1 = scmp.lt.s32.totalorder %s1139_s15, 3 }
   0x4   : > { %p189_p2 = pnand %p1025_p0, %p188_p1 }
   0x5   : > { %p224_p3 = scmp.lt.s32.totalorder (!%p189_p2), %s1021_s16, 1  ;;  %v1141_v0 = vmov (!%p189_p2), 0.0   ;;  %vm1142_vm0 = vmmov (!%p189_p2), 0   ;;  %vm248_vm1 = vcmask (!%p189_p2), 64512   ;;  %s1143_s27 = smov (!%p189_p2), 120   ;;  %vm926_vm2 = vcmask (!%p189_p2), 130048  }
   0x6   : > { %192 = sbr.rel (%p189_p2) target bundleno = 1466 (0x5ba), region = 36  ;;  %1061 = vmatprep.subr.mxu0 (!%p189_p2), %v1141_v0  ;;  %1063 = vmatprep.mubr.msk.f32.mxu0 (!%p189_p2), %vm1142_vm0, %v1141_v0  ;;  %s1144_s28 = smov (!%p189_p2), 112   ;;  %vm928_vm3 = vcmask (!%p189_p2), 195584   ;;  %vm930_vm4 = vcmask (!%p189_p2), 261120  }
   0x7   : > { %1066 = vmatprep.subr.mxu1 (!%p189_p2), %v1141_v0  ;;  %1068 = vmatprep.mubr.msk.f32.mxu1 (!%p189_p2), %vm1142_vm0, %v1141_v0  ;;  %s1145_s29 = smov (!%p189_p2), 104   ;;  %s1146_s7 = smov (!%p189_p2), 8  }
   0x8   : > { %s1147_s8 = smov (!%p189_p2), 16   ;;  %s1148_s9 = smov (!%p189_p2), 24  }
   0xd   : > { %s1282_s16 = smov (!%p224_p3, %s1021_s16), 1 }
   0xe   : > { %s1188_s17 = sshll.u32 %s1282_s16, 3 }
   0xf   : > { %s231_s20 = scalar_lea.vmem %s1277_s1, %s1188_s17  ;;  %s227_s23 = scalar_lea.vmem %s1276_s0, %s1188_s17 }
  0x10   : > { %v245_v1 = vld [vmem:[%s231_s20] sm:$0xff]  ;;  %s239_s26 = scalar_lea.vmem %s1279_s3, %s1188_s17  ;;  %s235_s6 = scalar_lea.vmem %s1278_s2, %s1188_s17 }
  0x11   : > { %1062 = vmatpush3.xpose.msk.msra.mxu0 %vm248_vm1, %v245_v1  ;;  %v244_v2 = vld [vmem:[%s227_s23] sm:$0xff]  ;;  %413 = vrot.lane.b32.xlu1 %v245_v1, %s1143_s27  ;;  %s243_s12 = scalar_lea.vmem %s1280_s4, %s1188_s17 }
  0x12   : > { %1076 = vmatprep.subr.mxu0 %v1141_v0  ;;  %v1207_v4 = vld [vmem:[%s239_s26] sm:$0xff] }
  0x13   : > { %v1221_v14 = vld [vmem:[%s235_s6] sm:$0xff] }
  0x14   : > { %1064 = vmatmul.mubr.msk.f32.vlgmr.msra.gmra.mrb[0].mxu0 %vm248_vm1, %v244_v2  ;;  %1067 = vmatpush3.msra.mxu1 %v1221_v14 }
  0x15   : > { %1078 = vmatprep.mubr.msk.f32.mxu0 %vm1142_vm0, %v1141_v0  ;;  %411 = vrot.lane.b32.xlu1 %v244_v2, %s1143_s27 }
  0x16   : > { %1071 = vmatprep.subr.mxu1 %v1141_v0 }
  0x19   : > { %579 = vrot.lane.b32.xlu1 %v244_v2, %s1144_s28 }
  0x1d   : > { %748 = vrot.lane.b32.xlu1 %v245_v1, %s1145_s29 }
  0x21   : > { %746 = vrot.lane.b32.xlu1 %v244_v2, %s1145_s29 }
  0x83   : > { %v414_v15 = vpop.permute.xlu1 %413 }
  0x87   : > { %v412_v17 = vpop.permute.xlu1 %411 }
  0x8b   : > { %v580_v19 = vpop.permute.xlu1 %579 }
  0x8f   : > { %v749_v22 = vpop.permute.xlu1 %748 }
  0x93   : > { %v747_v23 = vpop.permute.xlu1 %746 }
  0xe7   : > { %v321_v3 = vpop.f32.mrb[0].mxu0 }
  0xe8   : > { %v325_v5 = vmul.f32 0.35355338, %v321_v3  ;;  %v1065_v6 = vpop.f32.mrb[1].mxu0 }
  0xea   : > { %v326_v7 = vadd.f32 %v325_v5, %v1207_v4 }
  0xec   : > { %v327_v8 = vsel %vm248_vm1, %v326_v7, -inf }
  0xed   : > { %328 = vmax.xlane.f32.xlu0 %v327_v8 }
 0x17a   : > { %v329_v9 = vpop.xlane.xlu0 %328 }
 0x17b   : > { %v330_v10 = vsub.f32 %v326_v7, %v329_v9 }
 0x17d   : > { %v331_v11 = vmul.f32 1.442695, %v330_v10 }
 0x17f   : > { %1117 = vpow2.f32 %v331_v11 }
 0x189   : > { %v1118_v12 = vpop.eup %1117 }
 0x18a   : > { %v333_v13 = vsel %vm248_vm1, %v1118_v12, 0.0 }
 0x18b   : > { %334 = vadd.xlane.f32.xlu0 %v333_v13 }
 0x1a1   : > { %581 = vrot.lane.b32.xlu0 %v245_v1, %s1144_s28 }
 0x218   : > { %v335_v16 = vpop.xlane.xlu0 %334 }
 0x219   : > { %1119 = vrcp.f32 %v335_v16 }
 0x21c   : > { %v582_v21 = vpop.permute.xlu0 %581 }
 0x223   : > { %v1120_v18 = vpop.eup %1119 }
 0x224   : > { %v337_v20 = vmul.f32 %v1120_v18, %v1118_v12 }
 0x226   : > { %1069 = vmatmul.mubr.msk.f32.vlgmr.msra.gmra.mrb[0].mxu1 %vm248_vm1, %v337_v20 }
 0x227   : > { %1072 = vmatpush3.xpose.msk.msra.mxu1 %vm248_vm1, %v414_v15  ;;  %1073 = vmatprep.mubr.msk.f32.mxu1 %vm1142_vm0, %v1141_v0 }
 0x228   : > { %1081 = vmatprep.subr.mxu1 %v1141_v0 }
 0x22a   : > { %1074 = vmatmul.mubr.msk.f32.vlgmr.msra.gmra.mrb[2].mxu1 %vm248_vm1, %v412_v17 }
 0x22b   : > { %1082 = vmatpush3.xpose.msk.msra.mxu1 %vm248_vm1, %v582_v21  ;;  %1083 = vmatprep.mubr.msk.f32.mxu1 %vm1142_vm0, %v1141_v0 }
 0x22c   : > { %1091 = vmatprep.subr.mxu1 %v1141_v0 }
 0x22e   : > { %1084 = vmatmul.mubr.msk.f32.vlgmr.msra.gmra.mrb[4].mxu1 %vm248_vm1, %v580_v19 }
 0x22f   : > { %1092 = vmatpush3.xpose.msk.msra.mxu1 %vm248_vm1, %v749_v22  ;;  %1093 = vmatprep.mubr.msk.f32.mxu1 %vm1142_vm0, %v1141_v0 }
 0x232   : > { %1094 = vmatmul.mubr.msk.f32.vlgmr.msra.gmra.mrb[6].mxu1 %vm248_vm1, %v747_v23 }
 0x2f9   : > { %v1241_v24 = vpop.f32.mrb[0].mxu1 }
 0x2fa   : > { %v1070_v25 = vpop.f32.mrb[1].mxu1 }
 0x2fd   : > { %v485_v26 = vpop.f32.mrb[2].mxu1 }
 0x2fe   : > { %v489_v27 = vmul.f32 0.35355338, %v485_v26  ;;  %v1075_v28 = vpop.f32.mrb[3].mxu1 }
 0x300   : > { %v490_v29 = vadd.f32 %v489_v27, %v1207_v4 }
 0x301   : > { %v653_v30 = vpop.f32.mrb[4].mxu1 }
 0x302   : > { %v657_v31 = vmul.f32 0.35355338, %v653_v30  ;;  %v491_v32 = vsel %vm248_vm1, %v490_v29, -inf  ;;  %v1085_v33 = vpop.f32.mrb[5].mxu1 }
 0x303   : > { %492 = vmax.xlane.f32.xlu1 %v491_v32 }
 0x304   : > { %v658_v34 = vadd.f32 %v657_v31, %v1207_v4 }
 0x305   : > { %v820_v35 = vpop.f32.mrb[6].mxu1 }
 0x306   : > { %v824_v36 = vmul.f32 0.35355338, %v820_v35  ;;  %v659_v37 = vsel %vm248_vm1, %v658_v34, -inf  ;;  %v1095_v38 = vpop.f32.mrb[7].mxu1 }
 0x307   : > { %660 = vmax.xlane.f32.xlu0 %v659_v37 }
 0x308   : > { %v825_v39 = vadd.f32 %v824_v36, %v1207_v4 }
 0x30a   : > { %v826_v40 = vsel %vm248_vm1, %v825_v39, -inf }
 0x30b   : > { %827 = vmax.xlane.f32.xlu1 %v826_v40 }
 0x390   : > { %v493_v41 = vpop.xlane.xlu1 %492 }
 0x391   : > { %v494_v42 = vsub.f32 %v490_v29, %v493_v41 }
 0x393   : > { %v495_v43 = vmul.f32 1.442695, %v494_v42 }
 0x394   : > { %v661_v44 = vpop.xlane.xlu0 %660 }
 0x395   : > { %1121 = vpow2.f32 %v495_v43  ;;  %v662_v45 = vsub.f32 %v658_v34, %v661_v44 }
 0x397   : > { %v663_v46 = vmul.f32 1.442695, %v662_v45 }
 0x398   : > { %v828_v51 = vpop.xlane.xlu1 %827 }
 0x399   : > { %1123 = vpow2.f32 %v663_v46  ;;  %v829_v52 = vsub.f32 %v825_v39, %v828_v51 }
 0x39b   : > { %v830_v53 = vmul.f32 1.442695, %v829_v52 }
 0x39d   : > { %1125 = vpow2.f32 %v830_v53 }
 0x39f   : > { %v1122_v47 = vpop.eup %1121 }
 0x3a0   : > { %v497_v48 = vsel %vm248_vm1, %v1122_v47, 0.0 }
 0x3a1   : > { %498 = vadd.xlane.f32.xlu1 %v497_v48 }
 0x3a3   : > { %v1124_v49 = vpop.eup %1123 }
 0x3a4   : > { %v665_v50 = vsel %vm248_vm1, %v1124_v49, 0.0 }
 0x3a5   : > { %666 = vadd.xlane.f32.xlu0 %v665_v50 }
 0x3a7   : > { %v1126_v54 = vpop.eup %1125 }
 0x3a8   : > { %v832_v55 = vsel %vm248_vm1, %v1126_v54, 0.0 }
 0x3b2   : > { %670 = vrot.lane.b32.xlu1 %v1221_v14, %s1144_s28 }
 0x3bb   : > { %503 = vrot.lane.b32.xlu0 %v1221_v14, %s1143_s27 }
 0x3d6   : > { %833 = vadd.xlane.f32.xlu1 %v832_v55 }
 0x3e7   : > { %837 = vrot.lane.b32.xlu1 %v1221_v14, %s1145_s29 }
 0x42e   : > { %v499_v56 = vpop.xlane.xlu1 %498 }
 0x42f   : > { %1127 = vrcp.f32 %v499_v56 }
 0x432   : > { %v667_v57 = vpop.xlane.xlu0 %666  ;;  %v671_v61 = vpop.permute.xlu1 %670 }
 0x433   : > { %1129 = vrcp.f32 %v667_v57 }
 0x436   : > { %v504_v58 = vpop.permute.xlu0 %503 }
 0x437   : > { %1077 = vmatpush3.msra.mxu0 %v504_v58 }
 0x438   : > { %1086 = vmatprep.subr.mxu0 %v1141_v0 }
 0x439   : > { %v1128_v59 = vpop.eup %1127 }
 0x43a   : > { %v501_v60 = vmul.f32 %v1128_v59, %v1122_v47 }
 0x43c   : > { %1079 = vmatmul.mubr.msk.f32.vlgmr.msra.gmra.mrb[2].mxu0 %vm248_vm1, %v501_v60 }
 0x43d   : > { %v1130_v62 = vpop.eup %1129  ;;  %1087 = vmatpush3.msra.mxu0 %v671_v61  ;;  %1088 = vmatprep.mubr.msk.f32.mxu0 %vm1142_vm0, %v1141_v0 }
 0x43e   : > { %v669_v63 = vmul.f32 %v1130_v62, %v1124_v49  ;;  %1096 = vmatprep.subr.mxu0 %v1141_v0 }
 0x440   : > { %1089 = vmatmul.mubr.msk.f32.vlgmr.msra.gmra.mrb[4].mxu0 %vm248_vm1, %v669_v63 }
 0x441   : > { %1098 = vmatprep.mubr.msk.f32.mxu0 %vm1142_vm0, %v1141_v0 }
 0x463   : > { %v834_v1 = vpop.xlane.xlu1 %833 }
 0x464   : > { %1131 = vrcp.f32 %v834_v1 }
 0x467   : > { %v838_v2 = vpop.permute.xlu1 %837 }
 0x468   : > { %1097 = vmatpush3.msra.mxu0 %v838_v2 }
 0x46e   : > { %v1132_v3 = vpop.eup %1131 }
 0x46f   : > { %v836_v4 = vmul.f32 %v1132_v3, %v1126_v54 }
 0x471   : > { %1099 = vmatmul.mubr.msk.f32.vlgmr.msra.gmra.mrb[6].mxu0 %vm248_vm1, %v836_v4 }
 0x50f   : > { %v575_v5 = vpop.f32.mrb[2].mxu0 }
 0x510   : > { %914 = vrot.lane.b32.xlu0 %v575_v5, %s1146_s7  ;;  %v1080_v6 = vpop.f32.mrb[3].mxu0 }
 0x513   : > { %v742_v7 = vpop.f32.mrb[4].mxu0 }
 0x514   : > { %918 = vrot.lane.b32.xlu1 %v742_v7, %s1147_s8  ;;  %v1090_v8 = vpop.f32.mrb[5].mxu0 }
 0x544   : > { %v909_v9 = vpop.f32.mrb[6].mxu0 }
 0x545   : > { %922 = vrot.lane.b32.xlu0 %v909_v9, %s1148_s9  ;;  %v1100_v0 = vpop.f32.mrb[7].mxu0 }
 0x582   : > { %v915_v10 = vpop.permute.xlu0 %914 }
 0x583   : > { %v925_v12 = vsel %vm248_vm1, %v1241_v24, %v915_v10 }
 0x586   : > { %v919_v11 = vpop.permute.xlu1 %918 }
 0x587   : > { %v927_v13 = vsel %vm926_vm2, %v925_v12, %v919_v11 }
 0x5b7   : > { %v923_v14 = vpop.permute.xlu0 %922 }
 0x5b8   : > { %v929_v15 = vsel %vm928_vm3, %v927_v13, %v923_v14 }
 0x5b9   : > { %931 = vst.msk [vmem:[%s243_s12] sm:$0xff] %vm930_vm4, %v929_v15 }
 0x5ba PF: > { %s14_s15 = sadd.s32 1, %s1139_s15  }
 0x5bb   : > { %p11_p4 = scmp.ge.s32.totalorder %s14_s15, 4  }
 0x5bd   :  { %13 = sbr.rel (!%p11_p4) target bundleno = 1 (0x1), region = 75 }

// kernel: transformer_forward.45
= control target key start
LH: loop header
LB: loop body
LE: loop exit
PB: predicated region body
PF: predicated region fallthrough
CT: control target
= control target key end

     0   :  { %vm29_vm0 = vcmask 261120   ;;  %vm18_vm1 = vcmask 523264   ;;  %v165_v3 = vmov 0.0   ;;  %s221_s1 = inlined_call_operand.vmem [shape: f32[32,64], index: 1, kind: input, shape index: {}]   ;;  %s222_s0 = inlined_call_operand.vmem [shape: f32[16,32], index: 0, kind: input, shape index: {}]   ;;  %s223_s2 = inlined_call_operand.vmem [shape: f32[1,64], index: 2, kind: input, shape index: {}]   ;;  %s224_s3 = inlined_call_operand.vmem [shape: f32[16,64], index: 3, kind: output, shape index: {}]  }
   0x1   :  { %v25_v0 = vld [vmem:[%s221_s1] sm:$0xff]  ;;  %v26_v1 = vld [vmem:[%s221_s1 + $0x8] sm:$0xff]  ;;  %v27_v2 = vld [vmem:[%s221_s1 + $0x10] sm:$0xff]  ;;  %20 = vst.msk [vmem:[#allocation2 + $0x8] sm:$0xff] %vm18_vm1, %v165_v3 }
   0x2   :  { %19 = vst.msk [vmem:[#allocation2] sm:$0xff] %vm18_vm1, %v165_v3  ;;  %v156_v4 = vpack.c.bf16 %v26_v1, %v25_v0  ;;  %v28_v5 = vld [vmem:[%s221_s1 + $0x18] sm:$0xff]  ;;  %v23_v6 = vld [vmem:[%s222_s0] sm:$0xff]  ;;  %v24_v8 = vld [vmem:[%s222_s0 + $0x8] sm:$0xff] }
   0x3   :  { %v160_v7 = vpack.c.bf16 %v28_v5, %v27_v2  ;;  %153 = vmatprep.mubr.msk.f32.mxu0 %vm29_vm0, %v23_v6  ;;  %v138_v15 = vld [vmem:[%s223_s2] ss:$0 sm:$0xff] }
   0x4   :  { %157 = vmatprep.subr.bf16.mxu0 %v156_v4 }
   0x5   :  { %159 = vmatpush3.bf16.msra.mxu0 %v156_v4 }
   0x6   :  { %161 = vmatprep.subr.bf16.mxu0 %v160_v7 }
   0x8   :  { %v22_v9 = vld [vmem:[#allocation2 + $0x8] sm:$0xff] }
   0x9   :  { %163 = vmatpush3.bf16.msra.mxu0 %v160_v7  ;;  %v21_v10 = vld [vmem:[#allocation2] sm:$0xff] }
   0xc   :  { %154 = vmatmul.mubr.msk.f32.vlgmr.msra.gmra.mrb[0].mxu0 %vm29_vm0, %v24_v8 }
  0xdf   :  { %v155_v11 = vpop.f32.mrb[0].mxu0 }
  0xe0   :  { %v112_v12 = vadd.f32 %v155_v11, %v22_v9  ;;  %v102_v13 = vpop.f32.mrb[1].mxu0 }
  0xe1   :  { %v111_v14 = vadd.f32 %v102_v13, %v21_v10 }
  0xe2   :  { %115 = vst.msk [vmem:[#allocation2 + $0x8] sm:$0xff] %vm18_vm1, %v112_v12 }
  0xe3   :  { %114 = vst.msk [vmem:[#allocation2] sm:$0xff] %vm18_vm1, %v111_v14 }
  0xe9   :  { %v120_v16 = vld [vmem:[#allocation2 + $0x8] sm:$0xff] }
  0xea   :  { %v129_v17 = vadd.f32 %v138_v15, %v120_v16  ;;  %v119_v18 = vld [vmem:[#allocation2] sm:$0xff] }
  0xeb   :  { %v128_v19 = vadd.f32 %v138_v15, %v119_v18 }
  0xec   :  { %131 = vst.msk [vmem:[%s224_s3 + $0x8] sm:$0xff] %vm18_vm1, %v129_v17 }
  0xed   :  { %130 = vst.msk [vmem:[%s224_s3] sm:$0xff] %vm18_vm1, %v128_v19 }

// kernel: transformer_forward.35
= control target key start
LH: loop header
LB: loop body
LE: loop exit
PB: predicated region body
PF: predicated region fallthrough
CT: control target
= control target key end

     0   :  { %vm27_vm0 = vcmask 261120   ;;  %vm42_vm1 = vcmask 523264   ;;  %v253_v3 = vmov 0.0   ;;  %s352_s1 = inlined_call_operand.vmem [shape: f32[64,32], index: 1, kind: input, shape index: {}]   ;;  %s353_s0 = inlined_call_operand.vmem [shape: f32[16,64], index: 0, kind: input, shape index: {}]   ;;  %s354_s2 = inlined_call_operand.vmem [shape: f32[1,32], index: 2, kind: input, shape index: {}]   ;;  %s355_s3 = inlined_call_operand.vmem [shape: f32[16,32], index: 3, kind: input, shape index: {}]   ;;  %s356_s4 = inlined_call_operand.vmem [shape: f32[1,32], index: 4, kind: input, shape index: {}]   ;;  %s357_s5 = inlined_call_operand.vmem [shape: f32[1,32], index: 5, kind: input, shape index: {}]   ;;  %s358_s6 = inlined_call_operand.vmem [shape: f32[16,32], index: 6, kind: output, shape index: {}]  }
   0x1   :  { %v34_v0 = vld [vmem:[%s352_s1] sm:$0xff]  ;;  %v35_v1 = vld [vmem:[%s352_s1 + $0x8] sm:$0xff]  ;;  %v36_v2 = vld [vmem:[%s352_s1 + $0x10] sm:$0xff]  ;;  %29 = vst.msk [vmem:[#allocation2 + $0x8] sm:$0xff] %vm27_vm0, %v253_v3 }
   0x2   :  { %28 = vst.msk [vmem:[#allocation2] sm:$0xff] %vm27_vm0, %v253_v3  ;;  %v232_v4 = vpack.c.bf16 %v35_v1, %v34_v0  ;;  %v37_v5 = vld [vmem:[%s352_s1 + $0x18] sm:$0xff]  ;;  %v38_v7 = vld [vmem:[%s352_s1 + $0x20] sm:$0xff]  ;;  %v39_v8 = vld [vmem:[%s352_s1 + $0x28] sm:$0xff] }
   0x3   :  { %v236_v6 = vpack.c.bf16 %v37_v5, %v36_v2  ;;  %v32_v9 = vld [vmem:[%s353_s0] sm:$0xff]  ;;  %v240_v10 = vpack.c.bf16 %v39_v8, %v38_v7  ;;  %v40_v11 = vld [vmem:[%s352_s1 + $0x30] sm:$0xff]  ;;  %v41_v12 = vld [vmem:[%s352_s1 + $0x38] sm:$0xff] }
   0x4   :  { %233 = vmatprep.subr.bf16.mxu0 %v232_v4  ;;  %229 = vmatprep.mubr.msk.f32.mxu0 %vm42_vm1, %v32_v9  ;;  %v244_v13 = vpack.c.bf16 %v41_v12, %v40_v11  ;;  %v33_v14 = vld [vmem:[%s353_s0 + $0x8] sm:$0xff]  ;;  %v200_v21 = vld [vmem:[%s354_s2] ss:$0 sm:$0xff] }
   0x5   :  { %235 = vmatpush3.bf16.msra.mxu0 %v232_v4  ;;  %v143_v24 = vld [vmem:[%s355_s3] sm:$0xff]  ;;  %v144_v27 = vld [vmem:[%s355_s3 + $0x8] sm:$0xff] }
   0x6   :  { %237 = vmatprep.subr.bf16.mxu0 %v236_v6  ;;  %v201_v49 = vld [vmem:[%s356_s4] ss:$0 sm:$0xff] }
   0x7   :  { %v202_v51 = vld [vmem:[%s357_s5] ss:$0 sm:$0xff] }
   0x8   :  { %v31_v15 = vld [vmem:[#allocation2 + $0x8] sm:$0xff] }
   0x9   :  { %239 = vmatpush3.bf16.msra.mxu0 %v236_v6  ;;  %v30_v16 = vld [vmem:[#allocation2] sm:$0xff] }
   0xa   :  { %241 = vmatprep.subr.bf16.mxu0 %v240_v10 }
   0xd   :  { %243 = vmatpush3.bf16.msra.mxu0 %v240_v10 }
   0xe   :  { %245 = vmatprep.subr.bf16.mxu0 %v244_v13 }
  0x11   :  { %247 = vmatpush3.bf16.msra.mxu0 %v244_v13 }
  0x14   :  { %230 = vmatmul.mubr.msk.f32.vlgmr.msra.gmra.mrb[0].mxu0 %vm42_vm1, %v33_v14 }
  0xe7   :  { %v231_v17 = vpop.f32.mrb[0].mxu0 }
  0xe8   :  { %v125_v18 = vadd.f32 %v231_v17, %v31_v15  ;;  %v115_v19 = vpop.f32.mrb[1].mxu0 }
  0xe9   :  { %v124_v20 = vadd.f32 %v115_v19, %v30_v16 }
  0xea   :  { %128 = vst.msk [vmem:[#allocation2 + $0x8] sm:$0xff] %vm27_vm0, %v125_v18 }
  0xeb   :  { %127 = vst.msk [vmem:[#allocation2] sm:$0xff] %vm27_vm0, %v124_v20 }
  0xf1   :  { %v133_v22 = vld [vmem:[#allocation2 + $0x8] sm:$0xff] }
  0xf2   :  { %v132_v23 = vld [vmem:[#allocation2] sm:$0xff]  ;;  %v142_v26 = vadd.f32 %v200_v21, %v133_v22 }
  0xf3   :  { %v141_v25 = vadd.f32 %v200_v21, %v132_v23 }
  0xf4   :  { %v146_v30 = vadd.f32 %v144_v27, %v142_v26 }
  0xf5   :  { %v145_v28 = vadd.f32 %v143_v24, %v141_v25 }
  0xf6   :  { %v150_v31 = vsel %vm27_vm0, %v146_v30, 0.0 }
  0xf7   :  { %v147_v29 = vsel %vm27_vm0, %v145_v28, 0.0 }
  0xf8   :  { %148 = vadd.xlane.f32.xlu0 %v147_v29 }
  0xfc   :  { %151 = vadd.xlane.f32.xlu0 %v150_v31 }
 0x185   :  { %v149_v32 = vpop.xlane.xlu0 %148 }
 0x186   :  { %v154_v33 = vmul.f32 0.03125, %v149_v32 }
 0x188   :  { %v156_v34 = vsub.f32 %v145_v28, %v154_v33 }
 0x189   :  { %v152_v35 = vpop.xlane.xlu0 %151 }
 0x18a   :  { %v155_v36 = vmul.f32 0.03125, %v152_v35  ;;  %v158_v37 = vmul.f32 %v156_v34, %v156_v34 }
 0x18c   :  { %v157_v38 = vsub.f32 %v146_v30, %v155_v36  ;;  %v160_v39 = vsel %vm27_vm0, %v158_v37, 0.0 }
 0x18d   :  { %161 = vadd.xlane.f32.xlu1 %v160_v39 }
 0x18e   :  { %v159_v40 = vmul.f32 %v157_v38, %v157_v38 }
 0x190   :  { %v163_v41 = vsel %vm27_vm0, %v159_v40, 0.0 }
 0x191   :  { %164 = vadd.xlane.f32.xlu1 %v163_v41 }
 0x21a   :  { %v162_v42 = vpop.xlane.xlu1 %161 }
 0x21b   :  { %v166_v43 = vmul.f32 0.03125, %v162_v42 }
 0x21d   :  { %v168_v44 = vadd.f32 1e-05, %v166_v43 }
 0x21e   :  { %v165_v45 = vpop.xlane.xlu1 %164 }
 0x21f   :  { %249 = vrsqrt.f32 %v168_v44  ;;  %v167_v46 = vmul.f32 0.03125, %v165_v45 }
 0x221   :  { %v169_v47 = vadd.f32 1e-05, %v167_v46 }
 0x223   :  { %251 = vrsqrt.f32 %v169_v47 }
 0x229   :  { %v250_v48 = vpop.eup %249 }
 0x22a   :  { %v172_v50 = vmul.f32 %v250_v48, %v156_v34 }
 0x22c   :  { %v181_v52 = vmul.f32 %v201_v49, %v172_v50 }
 0x22d   :  { %v252_v53 = vpop.eup %251 }
 0x22e   :  { %v190_v54 = vadd.f32 %v202_v51, %v181_v52  ;;  %v173_v55 = vmul.f32 %v252_v53, %v157_v38 }
 0x230   :  { %192 = vst.msk [vmem:[%s358_s6] sm:$0xff] %vm27_vm0, %v190_v54  ;;  %v182_v56 = vmul.f32 %v201_v49, %v173_v55 }
 0x232   :  { %v191_v57 = vadd.f32 %v202_v51, %v182_v56 }
 0x234   :  { %193 = vst.msk [vmem:[%s358_s6 + $0x8] sm:$0xff] %vm27_vm0, %v191_v57 }

// kernel: transformer_forward.44
= control target key start
LH: loop header
LB: loop body
LE: loop exit
PB: predicated region body
PF: predicated region fallthrough
CT: control target
= control target key end

     0   :  { %vm18_vm0 = vcmask 261120   ;;  %v164_v3 = vmov 0.0   ;;  %s220_s1 = inlined_call_operand.vmem [shape: f32[32,32], index: 1, kind: input, shape index: {}]   ;;  %s221_s0 = inlined_call_operand.vmem [shape: f32[16,32], index: 0, kind: input, shape index: {}]   ;;  %s222_s2 = inlined_call_operand.vmem [shape: f32[1,32], index: 2, kind: input, shape index: {}]   ;;  %s223_s3 = inlined_call_operand.vmem [shape: f32[16,32], index: 3, kind: output, shape index: {}]  }
   0x1   :  { %v25_v0 = vld [vmem:[%s220_s1] sm:$0xff]  ;;  %v26_v1 = vld [vmem:[%s220_s1 + $0x8] sm:$0xff]  ;;  %v27_v2 = vld [vmem:[%s220_s1 + $0x10] sm:$0xff]  ;;  %20 = vst.msk [vmem:[#allocation2 + $0x8] sm:$0xff] %vm18_vm0, %v164_v3 }
   0x2   :  { %19 = vst.msk [vmem:[#allocation2] sm:$0xff] %vm18_vm0, %v164_v3  ;;  %v155_v4 = vpack.c.bf16 %v26_v1, %v25_v0  ;;  %v28_v5 = vld [vmem:[%s220_s1 + $0x18] sm:$0xff]  ;;  %v23_v6 = vld [vmem:[%s221_s0] sm:$0xff]  ;;  %v24_v8 = vld [vmem:[%s221_s0 + $0x8] sm:$0xff] }
   0x3   :  { %v159_v7 = vpack.c.bf16 %v28_v5, %v27_v2  ;;  %152 = vmatprep.mubr.msk.f32.mxu0 %vm18_vm0, %v23_v6  ;;  %v137_v15 = vld [vmem:[%s222_s2] ss:$0 sm:$0xff] }
   0x4   :  { %156 = vmatprep.subr.bf16.mxu0 %v155_v4 }
   0x5   :  { %158 = vmatpush3.bf16.msra.mxu0 %v155_v4 }
   0x6   :  { %160 = vmatprep.subr.bf16.mxu0 %v159_v7 }
   0x8   :  { %v22_v9 = vld [vmem:[#allocation2 + $0x8] sm:$0xff] }
   0x9   :  { %162 = vmatpush3.bf16.msra.mxu0 %v159_v7  ;;  %v21_v10 = vld [vmem:[#allocation2] sm:$0xff] }
   0xc   :  { %153 = vmatmul.mubr.msk.f32.vlgmr.msra.gmra.mrb[0].mxu0 %vm18_vm0, %v24_v8 }
  0xdf   :  { %v154_v11 = vpop.f32.mrb[0].mxu0 }
  0xe0   :  { %v112_v12 = vadd.f32 %v154_v11, %v22_v9  ;;  %v102_v13 = vpop.f32.mrb[1].mxu0 }
  0xe1   :  { %v111_v14 = vadd.f32 %v102_v13, %v21_v10 }
  0xe2   :  { %114 = vst.msk [vmem:[#allocation2 + $0x8] sm:$0xff] %vm18_vm0, %v112_v12 }
  0xe3   :  { %113 = vst.msk [vmem:[#allocation2] sm:$0xff] %vm18_vm0, %v111_v14 }
  0xe9   :  { %v119_v16 = vld [vmem:[#allocation2 + $0x8] sm:$0xff] }
  0xea   :  { %v128_v17 = vadd.f32 %v137_v15, %v119_v16  ;;  %v118_v18 = vld [vmem:[#allocation2] sm:$0xff] }
  0xeb   :  { %v127_v19 = vadd.f32 %v137_v15, %v118_v18 }
  0xec   :  { %130 = vst.msk [vmem:[%s223_s3 + $0x8] sm:$0xff] %vm18_vm0, %v128_v17 }
  0xed   :  { %129 = vst.msk [vmem:[%s223_s3] sm:$0xff] %vm18_vm0, %v127_v19 }

// kernel: transformer_forward.59
= control target key start
LH: loop header
LB: loop body
LE: loop exit
PB: predicated region body
PF: predicated region fallthrough
CT: control target
= control target key end

     0   :  { %vm30_vm0 = vcmask 261120   ;;  %vm19_vm1 = vcmask 408576   ;;  %v205_v6 = vmov 0.0   ;;  %s270_s0 = inlined_call_operand.vmem [shape: f32[16,32], index: 0, kind: input, shape index: {}]   ;;  %s271_s1 = inlined_call_operand.vmem [shape: f32[32,50], index: 1, kind: input, shape index: {}]   ;;  %s272_s2 = inlined_call_operand.vmem [shape: f32[1,50], index: 2, kind: input, shape index: {}]   ;;  %s273_s3 = inlined_call_operand.hbm [shape: f32[16,50], index: 3, kind: output, shape index: {}]  }
   0x1   :  { %v26_v0 = vld [vmem:[%s271_s1] sm:$0xff]  ;;  %v27_v1 = vld [vmem:[%s271_s1 + $0x8] sm:$0xff]  ;;  %v28_v2 = vld [vmem:[%s271_s1 + $0x10] sm:$0xff]  ;;  %21 = vst.msk [vmem:[#allocation2 + $0x8] sm:$0xff] %vm19_vm1, %v205_v6 }
   0x2   :  { %v169_v3 = vpack.c.bf16 %v27_v1, %v26_v0  ;;  %v29_v4 = vld [vmem:[%s271_s1 + $0x18] sm:$0xff]  ;;  %v24_v5 = vld [vmem:[%s270_s0] sm:$0xff]  ;;  %20 = vst.msk [vmem:[#allocation2] sm:$0xff] %vm19_vm1, %v205_v6 }
   0x3   :  { %v173_v7 = vpack.c.bf16 %v29_v4, %v28_v2  ;;  %166 = vmatprep.mubr.msk.f32.mxu0 %vm30_vm0, %v24_v5 }
   0x4   :  { %8 = vsyncpa [#allocation4], 0  ;;  %170 = vmatprep.subr.bf16.mxu0 %v169_v3  ;;  %v25_v8 = vld [vmem:[%s270_s0 + $0x8] sm:$0xff]  ;;  %v151_v15 = vld [vmem:[%s272_s2] ss:$0 sm:$0xff]  ;;  %s206_s25 = smov [#allocation3]  }
   0x5   :  { %172 = vmatpush3.bf16.msra.mxu0 %v169_v3  ;;  %s138_s26 = sshll.u32 %s206_s25, 4  ;;  %s139_s26 = int_to_ptr.vmem [resolvable:$true] %s138_s26 }
   0x6   :  { %174 = vmatprep.subr.bf16.mxu0 %v173_v7  ;;  %s181_s0 = scalar_lea.vmem %s139_s26, 256  ;;  %p186_p1 = scmp.lt.s32.totalorder %s139_s26, %s139_s26 }
   0x7   :  { %p182_p0 = scmp.ne.s32.totalorder %s139_s26, %s181_s0  ;;  %p187_p2 = scmp.lt.s32.totalorder %s181_s0, %s181_s0 }
   0x8   :  { %v23_v9 = vld [vmem:[#allocation2 + $0x8] sm:$0xff] }
   0x9   :  { %176 = vmatpush3.bf16.msra.mxu0 %v173_v7  ;;  %v22_v10 = vld [vmem:[#allocation2] sm:$0xff]  ;;  %p188_p3 = por %p187_p2, %p186_p1 }
   0xb   :  { %p189_p4 = pnand %p188_p3, %p182_p0 }
   0xc   :  { %167 = vmatmul.mubr.msk.f32.vlgmr.msra.gmra.mrb[0].mxu0 %vm30_vm0, %v25_v8 }
  0xdf   :  { %v168_v11 = vpop.f32.mrb[0].mxu0 }
  0xe0   :  { %v113_v12 = vadd.f32 %v168_v11, %v23_v9  ;;  %v103_v13 = vpop.f32.mrb[1].mxu0 }
  0xe1   :  { %v112_v14 = vadd.f32 %v103_v13, %v22_v10 }
  0xe2   :  { %116 = vst.msk [vmem:[#allocation2 + $0x8] sm:$0xff] %vm19_vm1, %v113_v12 }
  0xe3   :  { %115 = vst.msk [vmem:[#allocation2] sm:$0xff] %vm19_vm1, %v112_v14 }
  0xe9   :  { %v121_v16 = vld [vmem:[#allocation2 + $0x8] sm:$0xff] }
  0xea   :  { %v120_v17 = vld [vmem:[#allocation2] sm:$0xff]  ;;  %v130_v18 = vadd.f32 %v151_v15, %v121_v16 }
  0xeb   :  { %v129_v19 = vadd.f32 %v151_v15, %v120_v17 }
  0xec   :  { %132 = vst.msk [vmem:[#allocation3 + $0x8] sm:$0xff] %vm19_vm1, %v130_v18 }
  0xed   :  { %131 = vst.msk [vmem:[#allocation3] sm:$0xff] %vm19_vm1, %v129_v19 }
  0xee   :  { %192 = shalt.err (!%p189_p4)
}
  0xef   :  { %s193_s28 = scalar_lea.hbm %s273_s3, 256 }
  0xf0   :  { %p194_p5 = scmp.ne.s32.totalorder %s273_s3, %s193_s28  ;;  %p197_p6 = scmp.lt.u32.totalorder %s193_s28, %s273_s3 }
  0xf2   :  { %p199_p7 = pnand %p197_p6, %p194_p5 }
  0xf4   :  { %202 = shalt.err (!%p199_p7)
}
  0xf5   :  { %s207_s6 = smov 128   ;;  %s208_s7 = smov 8  }
  0xf6   :  { %144 = dma.vmem_to_hbm [thread:$0]  %s139_s26, 256, %s273_s3, [#allocation4], %s207_s6, %s207_s6, %s208_s7  }
  0xf7   :  { %203 = dma.done.wait [#allocation4], 256  }
  0xf8   :  { %204 = vsyncadd [#allocation4], 4294967040 }
  0xf9   :  { %148 = vsyncpa [#allocation4], 1 }

</bundles_post_ra>
